<compile_context>
chip_gen: v7x
topology: tpu7x:2x2x1
jax: 0.10.0
libtpu: 0.0.40
codegen_flags: <defaults>
</compile_context>

<pallas_src>
import jax
import jax.numpy as jnp
import numpy as np
from jax.experimental import pallas as pl
from jax.experimental.pallas import tpu as pltpu

HIGH = jax.lax.Precision.HIGHEST


# ----------------------------------------------------------------------------
# Glue helpers (layout only — no heavy compute here)
# ----------------------------------------------------------------------------
def _round_up(x, m):
    return (x + m - 1) // m * m


def _pad_ext_flat(img, total_len, c_pad=None):
    """(N, C, H, W) -> (N, C_pad, total_len) padded flattened layout.

    Zero-pads spatially by 1 (3x3 halo), flattens row-major to length
    pp = (H+2)*(W+2) and places it at lane offset g = (W+2)+1 inside a zero
    vector of length total_len, so every 3x3 tap is a static contiguous lane
    slice.  Optionally zero-pads the channel axis to c_pad (full sublane tiles).
    """
    n, cc, hh, ww = img.shape
    wpad = ww + 2
    pp = (hh + 2) * wpad
    g = wpad + 1
    flat = jnp.pad(img, ((0, 0), (0, 0), (1, 1), (1, 1))).reshape(n, cc, pp)
    c_extra = 0 if c_pad is None else c_pad - cc
    return jnp.pad(flat, ((0, 0), (0, c_extra), (g, total_len - pp - g)))


def _taps(w):
    """(Co, Ci, 3, 3) -> (9, Co, Ci), tap index = dh*3 + dw."""
    co, ci, _, _ = w.shape
    return jnp.transpose(w, (2, 3, 0, 1)).reshape(9, co, ci)


def _stack_taps(t, ci_pad=None):
    """(9, Co, Ci) -> (Co, 9*Ci_pad): conv = W_stacked @ tap-stacked input."""
    _, co, ci = t.shape
    if ci_pad is not None and ci_pad != ci:
        t = jnp.pad(t, ((0, 0), (0, 0), (0, ci_pad - ci)))
    return jnp.transpose(t, (1, 0, 2)).reshape(co, -1)


def _blockdiag(a, b):
    z01 = jnp.zeros((a.shape[0], b.shape[1]), a.dtype)
    z10 = jnp.zeros((b.shape[0], a.shape[1]), a.dtype)
    return jnp.concatenate([jnp.concatenate([a, z01], 1),
                            jnp.concatenate([z10, b], 1)], 0)


# ----------------------------------------------------------------------------
# Pallas kernels
# ----------------------------------------------------------------------------
def _make_freq_kernel(c, wpad, pp_pad, g, inv_count):
    """Frequency branch on (2C, Pp_pad) tiles: fused mag/pha 3x3 conv (one
    K=9*2C dot), stacked pooled-softmax gating, fused 1x1 chains, and a single
    [real; imag]-stacked output (sin folded into cos via a pi/2 phase shift)."""
    c2 = 2 * c
    deltas = [(dh - 1) * wpad + (dw - 1) for dh in range(3) for dw in range(3)]

    def kernel(xe_ref, mask_ref, swap_ref, w3_ref, b3_ref,
               w1_ref, b1_ref, w2_ref, b2_ref, out_ref):
        # ---- fused 3x3 conv: in-register im2col -> ONE (2C, 9*2C) dot -------
        stack = jnp.concatenate(
            [xe_ref[0, :, g + d: g + d + pp_pad] for d in deltas], axis=0)
        conv = jnp.dot(w3_ref[...], stack, precision=HIGH,
                       preferred_element_type=jnp.float32) + b3_ref[...]
        conv = jnp.maximum(conv, 0.0)                     # stacked [mag_ ; pha_]

        x0 = xe_ref[0, :, g: g + pp_pad]                  # stacked [mag ; pha]
        msk = mask_ref[...]                               # (1, Pp) valid pixels

        # ---- adaptive_avg_pool + channel softmax (one stacked reduction) ----
        res = (conv - x0) * msk                           # [mag_res ; pha_res]
        # tiny permutation matmul swaps the halves -> [pha_res ; mag_res]
        res_sw = jnp.dot(swap_ref[...], res, precision=HIGH,
                         preferred_element_type=jnp.float32)
        pooled = jnp.sum(res_sw, axis=1, keepdims=True) * inv_count   # (2C, 1)

        row = jax.lax.broadcasted_iota(jnp.int32, (c2, 1), 0)
        top = (row < c).astype(jnp.float32)               # rows 0..C-1
        bot = 1.0 - top
        neg = jnp.float32(-1e30)
        mx = (top * jnp.max(pooled + bot * neg, axis=0, keepdims=True)
              + bot * jnp.max(pooled + top * neg, axis=0, keepdims=True))
        e = jnp.exp(pooled - mx)
        ssum = (top * jnp.sum(e * top, axis=0, keepdims=True)
                + bot * jnp.sum(e * bot, axis=0, keepdims=True))
        gate = e / ssum                                   # [pool2 ; pool1]

        s_in = conv * gate + x0                           # [mag1+mag ; pha1+pha]

        # ---- fused block-diagonal 1x1 chains ---------------------------------
        t1 = jnp.maximum(
            jnp.dot(w1_ref[...], s_in, precision=HIGH,
                    preferred_element_type=jnp.float32) + b1_ref[...], 0.0)
        # second 1x1 duplicates rows: -> [mag_out; mag_out; pha_out; pha_out]
        md_pd = jnp.maximum(
            jnp.dot(w2_ref[...], t1, precision=HIGH,
                    preferred_element_type=jnp.float32) + b2_ref[...], 0.0)
        mag_dup = md_pd[:c2]
        pha_dup = md_pd[c2:]
        # rows 0..C-1: real = mag*cos(pha); rows C..2C-1: imag = mag*sin(pha)
        phase_shift = bot * jnp.float32(0.5 * np.pi)
        out_ref[0] = mag_dup * jnp.cos(pha_dup - phase_shift)

    return kernel


def _make_main_kernel(wpad, pp_pad, g):
    """Main branch: 3x3 conv as one K=9*C_pad dot + ReLU + residual add."""
    deltas = [(dh - 1) * wpad + (dw - 1) for dh in range(3) for dw in range(3)]

    def kernel(ye_ref, xres_ref, w3_ref, b3_ref, out_ref):
        stack = jnp.concatenate(
            [ye_ref[0, :, g + d: g + d + pp_pad] for d in deltas], axis=0)
        conv = jnp.dot(w3_ref[...], stack, precision=HIGH,
                       preferred_element_type=jnp.float32) + b3_ref[...]
        out_ref[0] = jnp.maximum(conv, 0.0) + xres_ref[0]

    return kernel


# ----------------------------------------------------------------------------
# Forward wrapper
# ----------------------------------------------------------------------------
def apmg_forward(x, params):
    n, c, h, w = x.shape
    c2 = 2 * c
    wf = w // 2 + 1

    # frequency-branch geometry (padded-flat, lane-dense)
    wfp = wf + 2
    pp_f = (h + 2) * wfp
    g_f = wfp + 1
    pp_pad_f = _round_up(pp_f, 128)
    l_f = _round_up(2 * g_f + pp_pad_f, 128)
    # spatial-branch geometry
    wpp = w + 2
    pp_s = (h + 2) * wpp
    g_s = wpp + 1
    pp_pad_s = _round_up(pp_s, 128)
    l_s = _round_up(2 * g_s + pp_pad_s, 128)
    c_pad = _round_up(c, 8)
    assert l_f >= 2 * g_f + pp_pad_f and l_s >= 2 * g_s + pp_pad_s

    cp = pltpu.CompilerParams(dimension_semantics=("parallel",))

    # --- glue: FFT + polar decomposition (no Pallas FFT primitive) -----------
    fre = jnp.fft.rfft2(x, norm='backward')                  # (N, C, H, Wf)
    mag = jnp.abs(fre).astype(jnp.float32)
    pha = jnp.angle(fre).astype(jnp.float32)
    mp_ext = _pad_ext_flat(jnp.concatenate([mag, pha], axis=1), l_f)  # (N, 2C, l_f)

    mask_np = np.zeros((h + 2, wfp), np.float32)
    mask_np[1:1 + h, 1:1 + wf] = 1.0
    mask = jnp.asarray(np.pad(mask_np.reshape(1, pp_f),
                              ((0, 0), (0, pp_pad_f - pp_f))))

    swap_np = np.zeros((c2, c2), np.float32)                 # half-swap permutation
    swap_np[:c, c:] = np.eye(c, dtype=np.float32)
    swap_np[c:, :c] = np.eye(c, dtype=np.float32)
    swap = jnp.asarray(swap_np)

    # fused per-tap block-diagonal 3x3 weight, stacked to (2C, 9*2C)
    t_m, t_p = _taps(params['mag_w']), _taps(params['pha_w'])
    z9 = jnp.zeros_like(t_m)
    t_bd = jnp.concatenate([jnp.concatenate([t_m, z9], 2),
                            jnp.concatenate([z9, t_p], 2)], 1)       # (9, 2C, 2C)
    w3f = _stack_taps(t_bd)                                          # (2C, 18C)
    b3f = jnp.concatenate([params['mag_b'], params['pha_b']]).reshape(c2, 1)

    # fused 1x1 chains: block-diag first conv; row-duplicating second conv
    w1m, w1p = params['magconv1_w'][:, :, 0, 0], params['phaconv1_w'][:, :, 0, 0]
    w1 = _blockdiag(w1m, w1p)                                        # (2C, 2C)
    b1 = jnp.concatenate([params['magconv1_b'], params['phaconv1_b']]).reshape(c2, 1)
    w2m, w2p = params['magconv2_w'][:, :, 0, 0], params['phaconv2_w'][:, :, 0, 0]
    zc = jnp.zeros((c, c), jnp.float32)
    w2m_row = jnp.concatenate([w2m, zc], 1)                          # acts on mag half
    w2p_row = jnp.concatenate([zc, w2p], 1)                          # acts on pha half
    w2 = jnp.concatenate([w2m_row, w2m_row, w2p_row, w2p_row], 0)    # (4C, 2C)
    b2 = jnp.concatenate([params['magconv2_b'], params['magconv2_b'],
                          params['phaconv2_b'], params['phaconv2_b']]).reshape(4 * c, 1)

    # --- Pallas kernel A: frequency-domain branch -----------------------------
    freq_kernel = _make_freq_kernel(c, wfp, pp_pad_f, g_f, 1.0 / (h * wf))
    out_freq = pl.pallas_call(
        freq_kernel,
        out_shape=jax.ShapeDtypeStruct((n, c2, pp_pad_f), jnp.float32),
        grid=(n,),
        in_specs=[
            pl.BlockSpec((1, c2, l_f), lambda i: (i, 0, 0)),         # stacked [mag; pha]
            pl.BlockSpec((1, pp_pad_f), lambda i: (0, 0)),           # valid-pixel mask
            pl.BlockSpec((c2, c2), lambda i: (0, 0)),                # half-swap matrix
            pl.BlockSpec((c2, 9 * c2), lambda i: (0, 0)),            # fused 3x3 taps
            pl.BlockSpec((c2, 1), lambda i: (0, 0)),                 # fused 3x3 bias
            pl.BlockSpec((c2, c2), lambda i: (0, 0)),                # fused 1x1 #1 w
            pl.BlockSpec((c2, 1), lambda i: (0, 0)),                 # fused 1x1 #1 b
            pl.BlockSpec((2 * c2, c2), lambda i: (0, 0)),            # fused 1x1 #2 w (dup rows)
            pl.BlockSpec((2 * c2, 1), lambda i: (0, 0)),             # fused 1x1 #2 b
        ],
        out_specs=pl.BlockSpec((1, c2, pp_pad_f), lambda i: (i, 0, 0)),
        compiler_params=cp,
    )(mp_ext, mask, swap, w3f, b3f, w1, b1, w2, b2)

    # --- glue: crop pad ring + lane padding, back to complex, inverse FFT -----
    spec = out_freq[:, :, :pp_f].reshape(n, c2, h + 2, wfp)[:, :, 1:1 + h, 1:1 + wf]
    y = jnp.fft.irfft2(jax.lax.complex(spec[:, :c], spec[:, c:]),
                       s=(h, w), norm='backward')

    # --- Pallas kernel B: main 3x3 conv + ReLU + residual ---------------------
    y_ext = _pad_ext_flat(y.astype(jnp.float32), l_s, c_pad=c_pad)   # (N, 8, l_s)
    x_res = jnp.pad(x, ((0, 0), (0, 0), (1, 1), (1, 1))).reshape(n, c, pp_s)
    x_res = jnp.pad(x_res, ((0, 0), (0, 0), (0, pp_pad_s - pp_s)))
    w3m = _stack_taps(_taps(params['main_w']), ci_pad=c_pad)         # (C, 9*c_pad)
    b3m = params['main_b'].reshape(c, 1)

    main_kernel = _make_main_kernel(wpp, pp_pad_s, g_s)
    out_p = pl.pallas_call(
        main_kernel,
        out_shape=jax.ShapeDtypeStruct((n, c, pp_pad_s), jnp.float32),
        grid=(n,),
        in_specs=[pl.BlockSpec((1, c_pad, l_s), lambda i: (i, 0, 0)),
                  pl.BlockSpec((1, c, pp_pad_s), lambda i: (i, 0, 0)),
                  pl.BlockSpec((c, 9 * c_pad), lambda i: (0, 0)),
                  pl.BlockSpec((c, 1), lambda i: (0, 0))],
        out_specs=pl.BlockSpec((1, c, pp_pad_s), lambda i: (i, 0, 0)),
        compiler_params=cp,
    )(y_ext, x_res, w3m, b3m)

    return out_p[:, :, :pp_s].reshape(n, c, h + 2, wpp)[:, :, 1:1 + h, 1:1 + w]


# ----------------------------------------------------------------------------
# Deterministic parameter init (PyTorch Conv2d-style uniform fan-in bounds)
# ----------------------------------------------------------------------------
def init_params(key, c):
    def conv_init(k, co, ci, kh, kw):
        kw_, kb_ = jax.random.split(k)
        bound = 1.0 / np.sqrt(ci * kh * kw)
        wgt = jax.random.uniform(kw_, (co, ci, kh, kw), jnp.float32, -bound, bound)
        b = jax.random.uniform(kb_, (co,), jnp.float32, -bound, bound)
        return wgt, b

    keys = jax.random.split(key, 7)
    p = {}
    p['main_w'], p['main_b'] = conv_init(keys[0], c, c, 3, 3)
    p['mag_w'], p['mag_b'] = conv_init(keys[1], c, c, 3, 3)
    p['pha_w'], p['pha_b'] = conv_init(keys[2], c, c, 3, 3)
    p['magconv1_w'], p['magconv1_b'] = conv_init(keys[3], c, c, 1, 1)
    p['magconv2_w'], p['magconv2_b'] = conv_init(keys[4], c, c, 1, 1)
    p['phaconv1_w'], p['phaconv1_b'] = conv_init(keys[5], c, c, 1, 1)
    p['phaconv2_w'], p['phaconv2_b'] = conv_init(keys[6], c, c, 1, 1)
    return p


# ----------------------------------------------------------------------------
# Pure-JAX reference (mirrors the PyTorch forward) for a correctness check
# ----------------------------------------------------------------------------
def apmg_reference(x, params):
    n, c, h, w = x.shape

    def conv2d(t, wgt, b, pad):
        out = jax.lax.conv_general_dilated(
            t, wgt, window_strides=(1, 1), padding=[(pad, pad), (pad, pad)],
            dimension_numbers=('NCHW', 'OIHW', 'NCHW'), precision=HIGH)
        return out + b.reshape(1, -1, 1, 1)

    relu = lambda t: jnp.maximum(t, 0.0)
    fre = jnp.fft.rfft2(x, norm='backward')
    mag = jnp.abs(fre)
    pha = jnp.angle(fre)
    mag_ = relu(conv2d(mag, params['mag_w'], params['mag_b'], 1))
    pha_ = relu(conv2d(pha, params['pha_w'], params['pha_b'], 1))
    mag_res = mag_ - mag
    pha_res = pha_ - pha
    pool1 = jax.nn.softmax(jnp.mean(mag_res, axis=(2, 3), keepdims=True), axis=1)
    pool2 = jax.nn.softmax(jnp.mean(pha_res, axis=(2, 3), keepdims=True), axis=1)
    pha1 = pha_ * pool1
    mag1 = mag_ * pool2
    mag_out = mag1 + mag
    mag_out = relu(conv2d(mag_out, params['magconv1_w'], params['magconv1_b'], 0))
    mag_out = relu(conv2d(mag_out, params['magconv2_w'], params['magconv2_b'], 0))
    pha_out = pha1 + pha
    pha_out = relu(conv2d(pha_out, params['phaconv1_w'], params['phaconv1_b'], 0))
    pha_out = relu(conv2d(pha_out, params['phaconv2_w'], params['phaconv2_b'], 0))
    real = mag_out * jnp.cos(pha_out)
    imag = mag_out * jnp.sin(pha_out)
    y = jnp.fft.irfft2(jax.lax.complex(real, imag), s=(h, w), norm='backward')
    return relu(conv2d(y, params['main_w'], params['main_b'], 1)) + x


if __name__ == "__main__":
    N, C, H, W = 2, 4, 16, 16
    x = jax.random.normal(jax.random.PRNGKey(0), (N, C, H, W), dtype=jnp.float32)
    params = init_params(jax.random.PRNGKey(42), C)

    out = jax.jit(apmg_forward)(x, params)
    out = jax.block_until_ready(out)

    ref = apmg_reference(x, params)
    # In-kernel dots run at precision=HIGHEST (near-f32) -> tighter tolerance
    # than the previous bf16-multiply version.
    np.testing.assert_allclose(np.asarray(out), np.asarray(ref),
                               rtol=5e-3, atol=5e-3)
    print("KERNEL_OK")
</pallas_src>

<mosaic_0001>
module attributes {stable_mosaic.version = 11 : i64} {
  func.func @kernel(%arg0: i32, %arg1: memref<1x8x384xf32, #tpu.memory_space<vmem>>, %arg2: memref<1x256xf32, #tpu.memory_space<vmem>>, %arg3: memref<8x8xf32, #tpu.memory_space<vmem>>, %arg4: memref<8x72xf32, #tpu.memory_space<vmem>>, %arg5: memref<8x1xf32, #tpu.memory_space<vmem>>, %arg6: memref<8x8xf32, #tpu.memory_space<vmem>>, %arg7: memref<8x1xf32, #tpu.memory_space<vmem>>, %arg8: memref<16x8xf32, #tpu.memory_space<vmem>>, %arg9: memref<16x1xf32, #tpu.memory_space<vmem>>, %arg10: memref<1x8x256xf32, #tpu.memory_space<vmem>>) attributes {dimension_semantics = [#tpu.dimension_semantics<parallel>], iteration_bounds = array<i64: 2>, scalar_prefetch = 0 : i64, scratch_operands = 0 : i64, tpu.core_type = #tpu.core_type<tc>, window_params = [{transform_indices = @transform_0, window_bounds = array<i64: 1, 8, 384>}, {pipeline_mode = #tpu.pipeline_mode<synchronous>, transform_indices = @transform_1, window_bounds = array<i64: 1, 256>}, {pipeline_mode = #tpu.pipeline_mode<synchronous>, transform_indices = @transform_2, window_bounds = array<i64: 8, 8>}, {pipeline_mode = #tpu.pipeline_mode<synchronous>, transform_indices = @transform_3, window_bounds = array<i64: 8, 72>}, {pipeline_mode = #tpu.pipeline_mode<synchronous>, transform_indices = @transform_4, window_bounds = array<i64: 8, 1>}, {pipeline_mode = #tpu.pipeline_mode<synchronous>, transform_indices = @transform_5, window_bounds = array<i64: 8, 8>}, {pipeline_mode = #tpu.pipeline_mode<synchronous>, transform_indices = @transform_6, window_bounds = array<i64: 8, 1>}, {pipeline_mode = #tpu.pipeline_mode<synchronous>, transform_indices = @transform_7, window_bounds = array<i64: 16, 8>}, {pipeline_mode = #tpu.pipeline_mode<synchronous>, transform_indices = @transform_8, window_bounds = array<i64: 16, 1>}, {transform_indices = @transform_9, window_bounds = array<i64: 1, 8, 256>}]} {
    %c0 = arith.constant 0 : index
    %c0_0 = arith.constant 0 : index
    %c0_1 = arith.constant 0 : index
    %0 = vector.load %arg1[%c0, %c0_0, %c0_1] : memref<1x8x384xf32, #tpu.memory_space<vmem>>, vector<1x8x256xf32>
    %1 = vector.shape_cast %0 : vector<1x8x256xf32> to vector<8x256xf32>
    %c0_2 = arith.constant 0 : index
    %c0_3 = arith.constant 0 : index
    %c1 = arith.constant 1 : index
    %2 = vector.load %arg1[%c0_2, %c0_3, %c1] : memref<1x8x384xf32, #tpu.memory_space<vmem>>, vector<1x8x256xf32>
    %3 = vector.shape_cast %2 : vector<1x8x256xf32> to vector<8x256xf32>
    %c0_4 = arith.constant 0 : index
    %c0_5 = arith.constant 0 : index
    %c2 = arith.constant 2 : index
    %4 = vector.load %arg1[%c0_4, %c0_5, %c2] : memref<1x8x384xf32, #tpu.memory_space<vmem>>, vector<1x8x256xf32>
    %5 = vector.shape_cast %4 : vector<1x8x256xf32> to vector<8x256xf32>
    %c0_6 = arith.constant 0 : index
    %c0_7 = arith.constant 0 : index
    %c11 = arith.constant 11 : index
    %6 = vector.load %arg1[%c0_6, %c0_7, %c11] : memref<1x8x384xf32, #tpu.memory_space<vmem>>, vector<1x8x256xf32>
    %7 = vector.shape_cast %6 : vector<1x8x256xf32> to vector<8x256xf32>
    %c0_8 = arith.constant 0 : index
    %c0_9 = arith.constant 0 : index
    %c12 = arith.constant 12 : index
    %8 = vector.load %arg1[%c0_8, %c0_9, %c12] : memref<1x8x384xf32, #tpu.memory_space<vmem>>, vector<1x8x256xf32>
    %9 = vector.shape_cast %8 : vector<1x8x256xf32> to vector<8x256xf32>
    %c0_10 = arith.constant 0 : index
    %c0_11 = arith.constant 0 : index
    %c13 = arith.constant 13 : index
    %10 = vector.load %arg1[%c0_10, %c0_11, %c13] : memref<1x8x384xf32, #tpu.memory_space<vmem>>, vector<1x8x256xf32>
    %11 = vector.shape_cast %10 : vector<1x8x256xf32> to vector<8x256xf32>
    %c0_12 = arith.constant 0 : index
    %c0_13 = arith.constant 0 : index
    %c22 = arith.constant 22 : index
    %12 = vector.load %arg1[%c0_12, %c0_13, %c22] : memref<1x8x384xf32, #tpu.memory_space<vmem>>, vector<1x8x256xf32>
    %13 = vector.shape_cast %12 : vector<1x8x256xf32> to vector<8x256xf32>
    %c0_14 = arith.constant 0 : index
    %c0_15 = arith.constant 0 : index
    %c23 = arith.constant 23 : index
    %14 = vector.load %arg1[%c0_14, %c0_15, %c23] : memref<1x8x384xf32, #tpu.memory_space<vmem>>, vector<1x8x256xf32>
    %15 = vector.shape_cast %14 : vector<1x8x256xf32> to vector<8x256xf32>
    %c0_16 = arith.constant 0 : index
    %c0_17 = arith.constant 0 : index
    %c24 = arith.constant 24 : index
    %16 = vector.load %arg1[%c0_16, %c0_17, %c24] : memref<1x8x384xf32, #tpu.memory_space<vmem>>, vector<1x8x256xf32>
    %17 = vector.shape_cast %16 : vector<1x8x256xf32> to vector<8x256xf32>
    %18 = tpu.concatenate %1, %3, %5, %7, %9, %11, %13, %15, %17 in 0 : vector<8x256xf32>, vector<8x256xf32>, vector<8x256xf32>, vector<8x256xf32>, vector<8x256xf32>, vector<8x256xf32>, vector<8x256xf32>, vector<8x256xf32>, vector<8x256xf32> -> vector<72x256xf32>
    %c0_18 = arith.constant 0 : index
    %c0_19 = arith.constant 0 : index
    %19 = vector.load %arg4[%c0_18, %c0_19] : memref<8x72xf32, #tpu.memory_space<vmem>>, vector<8x72xf32>
    %cst = arith.constant dense<0.000000e+00> : vector<8x256xf32>
    %20 = tpu.matmul %19, %18, %cst {dimension_numbers = #tpu.dot_dimension_numbers<[1], [0], [0], [1], [0, 0, 1, 1], [], []>, precision = #tpu.contract_precision<fp32>} : vector<8x72xf32>, vector<72x256xf32>, vector<8x256xf32> -> vector<8x256xf32>
    %c0_20 = arith.constant 0 : index
    %c0_21 = arith.constant 0 : index
    %21 = vector.load %arg5[%c0_20, %c0_21] : memref<8x1xf32, #tpu.memory_space<vmem>>, vector<8x1xf32>
    %22 = vector.broadcast %21 : vector<8x1xf32> to vector<8x256xf32>
    %23 = arith.addf %20, %22 : vector<8x256xf32>
    %cst_22 = arith.constant 0.000000e+00 : f32
    %24 = vector.broadcast %cst_22 : f32 to vector<8x256xf32>
    %25 = arith.maximumf %23, %24 : vector<8x256xf32>
    %c0_23 = arith.constant 0 : index
    %c0_24 = arith.constant 0 : index
    %c12_25 = arith.constant 12 : index
    %26 = vector.load %arg1[%c0_23, %c0_24, %c12_25] : memref<1x8x384xf32, #tpu.memory_space<vmem>>, vector<1x8x256xf32>
    %27 = vector.shape_cast %26 : vector<1x8x256xf32> to vector<8x256xf32>
    %c0_26 = arith.constant 0 : index
    %c0_27 = arith.constant 0 : index
    %28 = vector.load %arg2[%c0_26, %c0_27] : memref<1x256xf32, #tpu.memory_space<vmem>>, vector<1x256xf32>
    %29 = arith.subf %25, %27 : vector<8x256xf32>
    %30 = vector.broadcast %28 : vector<1x256xf32> to vector<8x256xf32>
    %31 = arith.mulf %29, %30 : vector<8x256xf32>
    %c0_28 = arith.constant 0 : index
    %c0_29 = arith.constant 0 : index
    %32 = vector.load %arg3[%c0_28, %c0_29] : memref<8x8xf32, #tpu.memory_space<vmem>>, vector<8x8xf32>
    %cst_30 = arith.constant dense<0.000000e+00> : vector<8x256xf32>
    %33 = tpu.matmul %32, %31, %cst_30 {dimension_numbers = #tpu.dot_dimension_numbers<[1], [0], [0], [1], [0, 0, 1, 1], [], []>, precision = #tpu.contract_precision<fp32>} : vector<8x8xf32>, vector<8x256xf32>, vector<8x256xf32> -> vector<8x256xf32>
    %cst_31 = arith.constant dense<0.000000e+00> : vector<8xf32>
    %34 = vector.multi_reduction <add>, %33, %cst_31 [1] : vector<8x256xf32> to vector<8xf32>
    %35 = vector.shape_cast %34 : vector<8xf32> to vector<8x1xf32>
    %cst_32 = arith.constant 0.0069444445 : f32
    %36 = vector.broadcast %cst_32 : f32 to vector<8x1xf32>
    %37 = arith.mulf %35, %36 : vector<8x1xf32>
    %38 = tpu.iota {dimensions = array<i32: 0>} : vector<8x1xi32>
    %c4_i32 = arith.constant 4 : i32
    %39 = vector.broadcast %c4_i32 : i32 to vector<8x1xi32>
    %40 = arith.cmpi slt, %38, %39 : vector<8x1xi32>
    %41 = arith.extui %40 : vector<8x1xi1> to vector<8x1xi32>
    %42 = arith.sitofp %41 : vector<8x1xi32> to vector<8x1xf32>
    %cst_33 = arith.constant 1.000000e+00 : f32
    %43 = vector.broadcast %cst_33 : f32 to vector<8x1xf32>
    %44 = arith.subf %43, %42 : vector<8x1xf32>
    %cst_34 = arith.constant -1.000000e+30 : f32
    %45 = vector.broadcast %cst_34 : f32 to vector<8x1xf32>
    %46 = arith.mulf %44, %45 : vector<8x1xf32>
    %47 = arith.addf %37, %46 : vector<8x1xf32>
    %cst_35 = arith.constant dense<0xFF800000> : vector<1xf32>
    %48 = vector.multi_reduction <maximumf>, %47, %cst_35 [0] : vector<8x1xf32> to vector<1xf32>
    %49 = vector.shape_cast %48 : vector<1xf32> to vector<1x1xf32>
    %50 = vector.broadcast %49 : vector<1x1xf32> to vector<8x1xf32>
    %51 = arith.mulf %42, %50 : vector<8x1xf32>
    %cst_36 = arith.constant -1.000000e+30 : f32
    %52 = vector.broadcast %cst_36 : f32 to vector<8x1xf32>
    %53 = arith.mulf %42, %52 : vector<8x1xf32>
    %54 = arith.addf %37, %53 : vector<8x1xf32>
    %cst_37 = arith.constant dense<0xFF800000> : vector<1xf32>
    %55 = vector.multi_reduction <maximumf>, %54, %cst_37 [0] : vector<8x1xf32> to vector<1xf32>
    %56 = vector.shape_cast %55 : vector<1xf32> to vector<1x1xf32>
    %57 = vector.broadcast %56 : vector<1x1xf32> to vector<8x1xf32>
    %58 = arith.mulf %44, %57 : vector<8x1xf32>
    %59 = arith.addf %51, %58 : vector<8x1xf32>
    %60 = arith.subf %37, %59 : vector<8x1xf32>
    %61 = math.exp %60 : vector<8x1xf32>
    %62 = arith.mulf %61, %42 : vector<8x1xf32>
    %cst_38 = arith.constant dense<0.000000e+00> : vector<1xf32>
    %63 = vector.multi_reduction <add>, %62, %cst_38 [0] : vector<8x1xf32> to vector<1xf32>
    %64 = vector.shape_cast %63 : vector<1xf32> to vector<1x1xf32>
    %65 = vector.broadcast %64 : vector<1x1xf32> to vector<8x1xf32>
    %66 = arith.mulf %42, %65 : vector<8x1xf32>
    %67 = arith.mulf %61, %44 : vector<8x1xf32>
    %cst_39 = arith.constant dense<0.000000e+00> : vector<1xf32>
    %68 = vector.multi_reduction <add>, %67, %cst_39 [0] : vector<8x1xf32> to vector<1xf32>
    %69 = vector.shape_cast %68 : vector<1xf32> to vector<1x1xf32>
    %70 = vector.broadcast %69 : vector<1x1xf32> to vector<8x1xf32>
    %71 = arith.mulf %44, %70 : vector<8x1xf32>
    %72 = arith.addf %66, %71 : vector<8x1xf32>
    %73 = arith.divf %61, %72 : vector<8x1xf32>
    %74 = vector.broadcast %73 : vector<8x1xf32> to vector<8x256xf32>
    %75 = arith.mulf %25, %74 : vector<8x256xf32>
    %76 = arith.addf %75, %27 : vector<8x256xf32>
    %c0_40 = arith.constant 0 : index
    %c0_41 = arith.constant 0 : index
    %77 = vector.load %arg6[%c0_40, %c0_41] : memref<8x8xf32, #tpu.memory_space<vmem>>, vector<8x8xf32>
    %cst_42 = arith.constant dense<0.000000e+00> : vector<8x256xf32>
    %78 = tpu.matmul %77, %76, %cst_42 {dimension_numbers = #tpu.dot_dimension_numbers<[1], [0], [0], [1], [0, 0, 1, 1], [], []>, precision = #tpu.contract_precision<fp32>} : vector<8x8xf32>, vector<8x256xf32>, vector<8x256xf32> -> vector<8x256xf32>
    %c0_43 = arith.constant 0 : index
    %c0_44 = arith.constant 0 : index
    %79 = vector.load %arg7[%c0_43, %c0_44] : memref<8x1xf32, #tpu.memory_space<vmem>>, vector<8x1xf32>
    %80 = vector.broadcast %79 : vector<8x1xf32> to vector<8x256xf32>
    %81 = arith.addf %78, %80 : vector<8x256xf32>
    %cst_45 = arith.constant 0.000000e+00 : f32
    %82 = vector.broadcast %cst_45 : f32 to vector<8x256xf32>
    %83 = arith.maximumf %81, %82 : vector<8x256xf32>
    %c0_46 = arith.constant 0 : index
    %c0_47 = arith.constant 0 : index
    %84 = vector.load %arg8[%c0_46, %c0_47] : memref<16x8xf32, #tpu.memory_space<vmem>>, vector<16x8xf32>
    %cst_48 = arith.constant dense<0.000000e+00> : vector<16x256xf32>
    %85 = tpu.matmul %84, %83, %cst_48 {dimension_numbers = #tpu.dot_dimension_numbers<[1], [0], [0], [1], [0, 0, 1, 1], [], []>, precision = #tpu.contract_precision<fp32>} : vector<16x8xf32>, vector<8x256xf32>, vector<16x256xf32> -> vector<16x256xf32>
    %c0_49 = arith.constant 0 : index
    %c0_50 = arith.constant 0 : index
    %86 = vector.load %arg9[%c0_49, %c0_50] : memref<16x1xf32, #tpu.memory_space<vmem>>, vector<16x1xf32>
    %87 = vector.broadcast %86 : vector<16x1xf32> to vector<16x256xf32>
    %88 = arith.addf %85, %87 : vector<16x256xf32>
    %cst_51 = arith.constant 0.000000e+00 : f32
    %89 = vector.broadcast %cst_51 : f32 to vector<16x256xf32>
    %90 = arith.maximumf %88, %89 : vector<16x256xf32>
    %91 = vector.extract_strided_slice %90 {offsets = [0, 0], sizes = [8, 256], strides = [1, 1]} : vector<16x256xf32> to vector<8x256xf32>
    %92 = vector.extract_strided_slice %90 {offsets = [8, 0], sizes = [8, 256], strides = [1, 1]} : vector<16x256xf32> to vector<8x256xf32>
    %cst_52 = arith.constant 1.57079637 : f32
    %93 = vector.broadcast %cst_52 : f32 to vector<8x1xf32>
    %94 = arith.mulf %44, %93 : vector<8x1xf32>
    %95 = vector.broadcast %94 : vector<8x1xf32> to vector<8x256xf32>
    %96 = arith.subf %92, %95 : vector<8x256xf32>
    %97 = math.cos %96 : vector<8x256xf32>
    %98 = arith.mulf %91, %97 : vector<8x256xf32>
    %c0_53 = arith.constant 0 : index
    %c0_54 = arith.constant 0 : index
    %c0_55 = arith.constant 0 : index
    %99 = vector.load %arg10[%c0_53, %c0_54, %c0_55] : memref<1x8x256xf32, #tpu.memory_space<vmem>>, vector<1x8x256xf32>
    %100 = vector.shape_cast %99 : vector<1x8x256xf32> to vector<8x256xf32>
    %101 = vector.shape_cast %98 : vector<8x256xf32> to vector<1x8x256xf32>
    tpu.vector_store %arg10[%c0_53, %c0_54, %c0_55], %101 {strides = array<i32>} : memref<1x8x256xf32, #tpu.memory_space<vmem>>, vector<1x8x256xf32>,
    return
  }
  func.func @transform_0(%arg0: i32) -> (i32, i32, i32) {
    %c0_i32 = arith.constant 0 : i32
    %c0_i32_0 = arith.constant 0 : i32
    %c0_i32_1 = arith.constant 0 : i32
    return %arg0, %c0_i32, %c0_i32_0 : i32, i32, i32
  }
  func.func @transform_1(%arg0: i32) -> (i32, i32) {
    %c0_i32 = arith.constant 0 : i32
    %c0_i32_0 = arith.constant 0 : i32
    %c0_i32_1 = arith.constant 0 : i32
    return %c0_i32, %c0_i32_0 : i32, i32
  }
  func.func @transform_2(%arg0: i32) -> (i32, i32) {
    %c0_i32 = arith.constant 0 : i32
    %c0_i32_0 = arith.constant 0 : i32
    %c0_i32_1 = arith.constant 0 : i32
    return %c0_i32, %c0_i32_0 : i32, i32
  }
  func.func @transform_3(%arg0: i32) -> (i32, i32) {
    %c0_i32 = arith.constant 0 : i32
    %c0_i32_0 = arith.constant 0 : i32
    %c0_i32_1 = arith.constant 0 : i32
    return %c0_i32, %c0_i32_0 : i32, i32
  }
  func.func @transform_4(%arg0: i32) -> (i32, i32) {
    %c0_i32 = arith.constant 0 : i32
    %c0_i32_0 = arith.constant 0 : i32
    %c0_i32_1 = arith.constant 0 : i32
    return %c0_i32, %c0_i32_0 : i32, i32
  }
  func.func @transform_5(%arg0: i32) -> (i32, i32) {
    %c0_i32 = arith.constant 0 : i32
    %c0_i32_0 = arith.constant 0 : i32
    %c0_i32_1 = arith.constant 0 : i32
    return %c0_i32, %c0_i32_0 : i32, i32
  }
  func.func @transform_6(%arg0: i32) -> (i32, i32) {
    %c0_i32 = arith.constant 0 : i32
    %c0_i32_0 = arith.constant 0 : i32
    %c0_i32_1 = arith.constant 0 : i32
    return %c0_i32, %c0_i32_0 : i32, i32
  }
  func.func @transform_7(%arg0: i32) -> (i32, i32) {
    %c0_i32 = arith.constant 0 : i32
    %c0_i32_0 = arith.constant 0 : i32
    %c0_i32_1 = arith.constant 0 : i32
    return %c0_i32, %c0_i32_0 : i32, i32
  }
  func.func @transform_8(%arg0: i32) -> (i32, i32) {
    %c0_i32 = arith.constant 0 : i32
    %c0_i32_0 = arith.constant 0 : i32
    %c0_i32_1 = arith.constant 0 : i32
    return %c0_i32, %c0_i32_0 : i32, i32
  }
  func.func @transform_9(%arg0: i32) -> (i32, i32, i32) {
    %c0_i32 = arith.constant 0 : i32
    %c0_i32_0 = arith.constant 0 : i32
    %c0_i32_1 = arith.constant 0 : i32
    return %arg0, %c0_i32, %c0_i32_0 : i32, i32, i32
  }
}

module attributes {stable_mosaic.version = 11 : i64} {
  func.func @kernel(%arg0: i32, %arg1: memref<1x8x512xf32, #tpu.memory_space<vmem>>, %arg2: memref<1x4x384xf32, #tpu.memory_space<vmem>>, %arg3: memref<4x72xf32, #tpu.memory_space<vmem>>, %arg4: memref<4x1xf32, #tpu.memory_space<vmem>>, %arg5: memref<1x4x384xf32, #tpu.memory_space<vmem>>) attributes {dimension_semantics = [#tpu.dimension_semantics<parallel>], iteration_bounds = array<i64: 2>, scalar_prefetch = 0 : i64, scratch_operands = 0 : i64, tpu.core_type = #tpu.core_type<tc>, window_params = [{transform_indices = @transform_0, window_bounds = array<i64: 1, 8, 512>}, {transform_indices = @transform_1, window_bounds = array<i64: 1, 4, 384>}, {pipeline_mode = #tpu.pipeline_mode<synchronous>, transform_indices = @transform_2, window_bounds = array<i64: 4, 72>}, {pipeline_mode = #tpu.pipeline_mode<synchronous>, transform_indices = @transform_3, window_bounds = array<i64: 4, 1>}, {transform_indices = @transform_4, window_bounds = array<i64: 1, 4, 384>}]} {
    %c0 = arith.constant 0 : index
    %c0_0 = arith.constant 0 : index
    %c0_1 = arith.constant 0 : index
    %0 = vector.load %arg1[%c0, %c0_0, %c0_1] : memref<1x8x512xf32, #tpu.memory_space<vmem>>, vector<1x8x384xf32>
    %1 = vector.shape_cast %0 : vector<1x8x384xf32> to vector<8x384xf32>
    %c0_2 = arith.constant 0 : index
    %c0_3 = arith.constant 0 : index
    %c1 = arith.constant 1 : index
    %2 = vector.load %arg1[%c0_2, %c0_3, %c1] : memref<1x8x512xf32, #tpu.memory_space<vmem>>, vector<1x8x384xf32>
    %3 = vector.shape_cast %2 : vector<1x8x384xf32> to vector<8x384xf32>
    %c0_4 = arith.constant 0 : index
    %c0_5 = arith.constant 0 : index
    %c2 = arith.constant 2 : index
    %4 = vector.load %arg1[%c0_4, %c0_5, %c2] : memref<1x8x512xf32, #tpu.memory_space<vmem>>, vector<1x8x384xf32>
    %5 = vector.shape_cast %4 : vector<1x8x384xf32> to vector<8x384xf32>
    %c0_6 = arith.constant 0 : index
    %c0_7 = arith.constant 0 : index
    %c18 = arith.constant 18 : index
    %6 = vector.load %arg1[%c0_6, %c0_7, %c18] : memref<1x8x512xf32, #tpu.memory_space<vmem>>, vector<1x8x384xf32>
    %7 = vector.shape_cast %6 : vector<1x8x384xf32> to vector<8x384xf32>
    %c0_8 = arith.constant 0 : index
    %c0_9 = arith.constant 0 : index
    %c19 = arith.constant 19 : index
    %8 = vector.load %arg1[%c0_8, %c0_9, %c19] : memref<1x8x512xf32, #tpu.memory_space<vmem>>, vector<1x8x384xf32>
    %9 = vector.shape_cast %8 : vector<1x8x384xf32> to vector<8x384xf32>
    %c0_10 = arith.constant 0 : index
    %c0_11 = arith.constant 0 : index
    %c20 = arith.constant 20 : index
    %10 = vector.load %arg1[%c0_10, %c0_11, %c20] : memref<1x8x512xf32, #tpu.memory_space<vmem>>, vector<1x8x384xf32>
    %11 = vector.shape_cast %10 : vector<1x8x384xf32> to vector<8x384xf32>
    %c0_12 = arith.constant 0 : index
    %c0_13 = arith.constant 0 : index
    %c36 = arith.constant 36 : index
    %12 = vector.load %arg1[%c0_12, %c0_13, %c36] : memref<1x8x512xf32, #tpu.memory_space<vmem>>, vector<1x8x384xf32>
    %13 = vector.shape_cast %12 : vector<1x8x384xf32> to vector<8x384xf32>
    %c0_14 = arith.constant 0 : index
    %c0_15 = arith.constant 0 : index
    %c37 = arith.constant 37 : index
    %14 = vector.load %arg1[%c0_14, %c0_15, %c37] : memref<1x8x512xf32, #tpu.memory_space<vmem>>, vector<1x8x384xf32>
    %15 = vector.shape_cast %14 : vector<1x8x384xf32> to vector<8x384xf32>
    %c0_16 = arith.constant 0 : index
    %c0_17 = arith.constant 0 : index
    %c38 = arith.constant 38 : index
    %16 = vector.load %arg1[%c0_16, %c0_17, %c38] : memref<1x8x512xf32, #tpu.memory_space<vmem>>, vector<1x8x384xf32>
    %17 = vector.shape_cast %16 : vector<1x8x384xf32> to vector<8x384xf32>
    %18 = tpu.concatenate %1, %3, %5, %7, %9, %11, %13, %15, %17 in 0 : vector<8x384xf32>, vector<8x384xf32>, vector<8x384xf32>, vector<8x384xf32>, vector<8x384xf32>, vector<8x384xf32>, vector<8x384xf32>, vector<8x384xf32>, vector<8x384xf32> -> vector<72x384xf32>
    %c0_18 = arith.constant 0 : index
    %c0_19 = arith.constant 0 : index
    %19 = vector.load %arg3[%c0_18, %c0_19] : memref<4x72xf32, #tpu.memory_space<vmem>>, vector<4x72xf32>
    %cst = arith.constant dense<0.000000e+00> : vector<4x384xf32>
    %20 = tpu.matmul %19, %18, %cst {dimension_numbers = #tpu.dot_dimension_numbers<[1], [0], [0], [1], [0, 0, 1, 1], [], []>, precision = #tpu.contract_precision<fp32>} : vector<4x72xf32>, vector<72x384xf32>, vector<4x384xf32> -> vector<4x384xf32>
    %c0_20 = arith.constant 0 : index
    %c0_21 = arith.constant 0 : index
    %21 = vector.load %arg4[%c0_20, %c0_21] : memref<4x1xf32, #tpu.memory_space<vmem>>, vector<4x1xf32>
    %22 = vector.broadcast %21 : vector<4x1xf32> to vector<4x384xf32>
    %23 = arith.addf %20, %22 : vector<4x384xf32>
    %cst_22 = arith.constant 0.000000e+00 : f32
    %24 = vector.broadcast %cst_22 : f32 to vector<4x384xf32>
    %25 = arith.maximumf %23, %24 : vector<4x384xf32>
    %c0_23 = arith.constant 0 : index
    %c0_24 = arith.constant 0 : index
    %c0_25 = arith.constant 0 : index
    %26 = vector.load %arg2[%c0_23, %c0_24, %c0_25] : memref<1x4x384xf32, #tpu.memory_space<vmem>>, vector<1x4x384xf32>
    %27 = vector.shape_cast %26 : vector<1x4x384xf32> to vector<4x384xf32>
    %28 = arith.addf %25, %27 : vector<4x384xf32>
    %c0_26 = arith.constant 0 : index
    %c0_27 = arith.constant 0 : index
    %c0_28 = arith.constant 0 : index
    %29 = vector.load %arg5[%c0_26, %c0_27, %c0_28] : memref<1x4x384xf32, #tpu.memory_space<vmem>>, vector<1x4x384xf32>
    %30 = vector.shape_cast %29 : vector<1x4x384xf32> to vector<4x384xf32>
    %31 = vector.shape_cast %28 : vector<4x384xf32> to vector<1x4x384xf32>
    tpu.vector_store %arg5[%c0_26, %c0_27, %c0_28], %31 {strides = array<i32>} : memref<1x4x384xf32, #tpu.memory_space<vmem>>, vector<1x4x384xf32>,
    return
  }
  func.func @transform_0(%arg0: i32) -> (i32, i32, i32) {
    %c0_i32 = arith.constant 0 : i32
    %c0_i32_0 = arith.constant 0 : i32
    %c0_i32_1 = arith.constant 0 : i32
    return %arg0, %c0_i32, %c0_i32_0 : i32, i32, i32
  }
  func.func @transform_1(%arg0: i32) -> (i32, i32, i32) {
    %c0_i32 = arith.constant 0 : i32
    %c0_i32_0 = arith.constant 0 : i32
    %c0_i32_1 = arith.constant 0 : i32
    return %arg0, %c0_i32, %c0_i32_0 : i32, i32, i32
  }
  func.func @transform_2(%arg0: i32) -> (i32, i32) {
    %c0_i32 = arith.constant 0 : i32
    %c0_i32_0 = arith.constant 0 : i32
    %c0_i32_1 = arith.constant 0 : i32
    return %c0_i32, %c0_i32_0 : i32, i32
  }
  func.func @transform_3(%arg0: i32) -> (i32, i32) {
    %c0_i32 = arith.constant 0 : i32
    %c0_i32_0 = arith.constant 0 : i32
    %c0_i32_1 = arith.constant 0 : i32
    return %c0_i32, %c0_i32_0 : i32, i32
  }
  func.func @transform_4(%arg0: i32) -> (i32, i32, i32) {
    %c0_i32 = arith.constant 0 : i32
    %c0_i32_0 = arith.constant 0 : i32
    %c0_i32_1 = arith.constant 0 : i32
    return %arg0, %c0_i32, %c0_i32_0 : i32, i32, i32
  }
}

</mosaic_0001>

<bundles_post_ra>
// kernel: reverse.0
= control target key start
LH: loop header
LB: loop body
LE: loop exit
PB: predicated region body
PF: predicated region fallthrough
CT: control target
= control target key end

     0   :  { %v71_v3 = vlaneseq  ;;  %v64_v9 = vld [vmem:[#allocation0 + $0x7] ss:$-1 sm:$0xff]  ;;  %v78_v12 = vld [vmem:[#allocation0 + $0x17] ss:$-1 sm:$0xff]  ;;  %s329_s0 = inlined_call_operand.vmem [shape: f32[2,4,16,7], index: 0, kind: input, shape index: {}]   ;;  %s330_s1 = inlined_call_operand.vmem [shape: f32[2,4,16,7], index: 1, kind: output, shape index: {}]  }
   0x1   :  { %v44_v0 = vld [vmem:[%s329_s0] sm:$0xff]  ;;  %v46_v1 = vld [vmem:[%s329_s0 + $0x8] sm:$0xff]  ;;  %v48_v2 = vld [vmem:[%s329_s0 + $0x10] sm:$0xff]  ;;  %v65_v10 = vrot.slane %v64_v9, 1  ;;  %v79_v14 = vrot.slane %v78_v12, 1 }
   0x2   :  { %45 = vst [vmem:[#allocation0 + $0x8] sm:$0xff] %v44_v0  ;;  %47 = vst [vmem:[#allocation0 + $0x18] sm:$0xff] %v46_v1  ;;  %v50_v4 = vld [vmem:[%s329_s0 + $0x18] sm:$0xff]  ;;  %v52_v5 = vld [vmem:[%s329_s0 + $0x20] sm:$0xff]  ;;  %v72_v11 = vshrl.u32 %v71_v3, 7 }
   0x3   :  { %49 = vst [vmem:[#allocation0 + $0x28] sm:$0xff] %v48_v2  ;;  %v54_v6 = vld [vmem:[%s329_s0 + $0x28] sm:$0xff]  ;;  %51 = vst [vmem:[#allocation0 + $0x38] sm:$0xff] %v50_v4  ;;  %v56_v7 = vld [vmem:[%s329_s0 + $0x30] sm:$0xff] }
   0x4   :  { %53 = vst [vmem:[#allocation0 + $0x48] sm:$0xff] %v52_v5  ;;  %55 = vst [vmem:[#allocation0 + $0x58] sm:$0xff] %v54_v6  ;;  %v58_v8 = vld [vmem:[%s329_s0 + $0x38] sm:$0xff]  ;;  %v92_v13 = vld [vmem:[#allocation0 + $0x27] ss:$-1 sm:$0xff]  ;;  %vm73_vm0 = vcmp.lt.s32.totalorder %v72_v11, 7 }
   0x5   :  { %57 = vst [vmem:[#allocation0 + $0x68] sm:$0xff] %v56_v7  ;;  %59 = vst [vmem:[#allocation0 + $0x78] sm:$0xff] %v58_v8  ;;  %v93_v15 = vrot.slane %v92_v13, 1  ;;  %v106_v16 = vld [vmem:[#allocation0 + $0x37] ss:$-1 sm:$0xff] }
   0x6   :  { %66 = vst [vmem:[#allocation1] sm:$0xff] %v65_v10  ;;  %v107_v17 = vrot.slane %v106_v16, 1  ;;  %v120_v18 = vld [vmem:[#allocation0 + $0x47] ss:$-1 sm:$0xff]  ;;  %v134_v19 = vld [vmem:[#allocation0 + $0x57] ss:$-1 sm:$0xff] }
   0x7   :  { %80 = vst [vmem:[#allocation1 + $0x8] sm:$0xff] %v79_v14  ;;  %94 = vst [vmem:[#allocation1 + $0x10] sm:$0xff] %v93_v15  ;;  %v121_v20 = vrot.slane %v120_v18, 1  ;;  %v135_v21 = vrot.slane %v134_v19, 1  ;;  %v148_v22 = vld [vmem:[#allocation0 + $0x67] ss:$-1 sm:$0xff] }
   0x8   :  { %v162_v23 = vld [vmem:[#allocation0 + $0x77] ss:$-1 sm:$0xff]  ;;  %108 = vst [vmem:[#allocation1 + $0x18] sm:$0xff] %v107_v17  ;;  %v149_v24 = vrot.slane %v148_v22, 1 }
   0x9   :  { %v163_v25 = vrot.slane %v162_v23, 1  ;;  %v69_v26 = vld [vmem:[#allocation0 + $0xf] ss:$-1 sm:$0xff]  ;;  %v83_v27 = vld [vmem:[#allocation0 + $0x1f] ss:$-1 sm:$0xff]  ;;  %122 = vst [vmem:[#allocation1 + $0x20] sm:$0xff] %v121_v20 }
   0xa   :  { %v97_v28 = vld [vmem:[#allocation0 + $0x2f] ss:$-1 sm:$0xff]  ;;  %136 = vst [vmem:[#allocation1 + $0x28] sm:$0xff] %v135_v21  ;;  %v70_v29 = vrot.slane %v69_v26, 1  ;;  %v84_v30 = vrot.slane %v83_v27, 1  ;;  %150 = vst [vmem:[#allocation1 + $0x30] sm:$0xff] %v149_v24 }
   0xb   :  { %v98_v31 = vrot.slane %v97_v28, 1  ;;  %v111_v32 = vld [vmem:[#allocation0 + $0x3f] ss:$-1 sm:$0xff]  ;;  %164 = vst [vmem:[#allocation1 + $0x38] sm:$0xff] %v163_v25  ;;  %v125_v34 = vld [vmem:[#allocation0 + $0x4f] ss:$-1 sm:$0xff] }
   0xc   :  { %v112_v33 = vrot.slane %v111_v32, 1  ;;  %v139_v35 = vld [vmem:[#allocation0 + $0x5f] ss:$-1 sm:$0xff]  ;;  %74 = vst.msk [vmem:[#allocation1] sm:$0xff] %vm73_vm0, %v70_v29  ;;  %88 = vst.msk [vmem:[#allocation1 + $0x8] sm:$0xff] %vm73_vm0, %v84_v30  ;;  %v126_v36 = vrot.slane %v125_v34, 1 }
   0xd   :  { %102 = vst.msk [vmem:[#allocation1 + $0x10] sm:$0xff] %vm73_vm0, %v98_v31  ;;  %v140_v37 = vrot.slane %v139_v35, 1  ;;  %v153_v38 = vld [vmem:[#allocation0 + $0x6f] ss:$-1 sm:$0xff]  ;;  %v167_v39 = vld [vmem:[#allocation0 + $0x7f] ss:$-1 sm:$0xff] }
   0xe   :  { %116 = vst.msk [vmem:[#allocation1 + $0x18] sm:$0xff] %vm73_vm0, %v112_v33  ;;  %v154_v40 = vrot.slane %v153_v38, 1  ;;  %v168_v41 = vrot.slane %v167_v39, 1  ;;  %130 = vst.msk [vmem:[#allocation1 + $0x20] sm:$0xff] %vm73_vm0, %v126_v36 }
   0xf   :  { %144 = vst.msk [vmem:[#allocation1 + $0x28] sm:$0xff] %vm73_vm0, %v140_v37 }
  0x10   :  { %158 = vst.msk [vmem:[#allocation1 + $0x30] sm:$0xff] %vm73_vm0, %v154_v40  ;;  %172 = vst.msk [vmem:[#allocation1 + $0x38] sm:$0xff] %vm73_vm0, %v168_v41 }
  0x13   :  { %v214_v42 = vld [vmem:[#allocation1] sm:$0xff]  ;;  %v216_v43 = vld [vmem:[#allocation1 + $0x8] sm:$0xff] }
  0x14   :  { %v218_v44 = vld [vmem:[#allocation1 + $0x10] sm:$0xff]  ;;  %215 = vst [vmem:[%s330_s1] sm:$0xff] %v214_v42  ;;  %217 = vst [vmem:[%s330_s1 + $0x8] sm:$0xff] %v216_v43 }
  0x15   :  { %219 = vst [vmem:[%s330_s1 + $0x10] sm:$0xff] %v218_v44  ;;  %v220_v45 = vld [vmem:[#allocation1 + $0x18] sm:$0xff]  ;;  %v222_v46 = vld [vmem:[#allocation1 + $0x20] sm:$0xff] }
  0x16   :  { %221 = vst [vmem:[%s330_s1 + $0x18] sm:$0xff] %v220_v45  ;;  %v224_v47 = vld [vmem:[#allocation1 + $0x28] sm:$0xff]  ;;  %223 = vst [vmem:[%s330_s1 + $0x20] sm:$0xff] %v222_v46 }
  0x17   :  { %225 = vst [vmem:[%s330_s1 + $0x28] sm:$0xff] %v224_v47  ;;  %v226_v48 = vld [vmem:[#allocation1 + $0x30] sm:$0xff]  ;;  %v228_v49 = vld [vmem:[#allocation1 + $0x38] sm:$0xff] }
  0x18   :  { %227 = vst [vmem:[%s330_s1 + $0x30] sm:$0xff] %v226_v48  ;;  %229 = vst [vmem:[%s330_s1 + $0x38] sm:$0xff] %v228_v49 }

// kernel: apmg_forward.2
= control target key start
LH: loop header
LB: loop body
LE: loop exit
PB: predicated region body
PF: predicated region fallthrough
CT: control target
= control target key end

     0   :  { %s3233_s30 = smov 0   ;;  %s3732_s0 = inlined_call_operand.vmem [shape: f32[2,8,384], index: 0, kind: input, shape index: {}]   ;;  %s3733_s1 = inlined_call_operand.vmem [shape: f32[1,256], index: 1, kind: input, shape index: {}]   ;;  %s3734_s2 = inlined_call_operand.vmem [shape: f32[8,8], index: 2, kind: input, shape index: {}]   ;;  %s3735_s3 = inlined_call_operand.vmem [shape: f32[8,72], index: 3, kind: input, shape index: {}]   ;;  %s3736_s4 = inlined_call_operand.vmem [shape: f32[8,1], index: 4, kind: input, shape index: {}]   ;;  %s3737_s5 = inlined_call_operand.vmem [shape: f32[8,8], index: 5, kind: input, shape index: {}]   ;;  %s3738_s6 = inlined_call_operand.vmem [shape: f32[8,1], index: 6, kind: input, shape index: {}]   ;;  %s3739_s7 = inlined_call_operand.vmem [shape: f32[16,8], index: 7, kind: input, shape index: {}]   ;;  %s3740_s8 = inlined_call_operand.vmem [shape: f32[16,1], index: 8, kind: input, shape index: {}]   ;;  %s3741_s9 = inlined_call_operand.vmem [shape: f32[2,8,256], index: 9, kind: output, shape index: {}]  }
   0x1 LB: > { %s2939_s10 = sadd.s32 4294967295, %s3165_s30   ;;  %p2943_p0 = scmp.ge.s32.totalorder %s3165_s30, 1  ;;  %s3165_s30 = sphi %s3233_s30, %s19_s30  }
   0x2   : > { %p287_p1 = scmp.lt.s32.totalorder %s3165_s30, 3 }
   0x4   : > { %p288_p2 = pnand %p2943_p0, %p287_p1 }
   0x5   : > { %p323_p3 = scmp.lt.s32.totalorder (!%p288_p2), %s2939_s10, 1  ;;  %s3167_s15 = smov (!%p288_p2), 127   ;;  %v3174_v3 = vmov (!%p288_p2), 0.0   ;;  %vm347_vm0 = vcmask (!%p288_p2), 1039360   ;;  %vm358_vm1 = vcmask (!%p288_p2), 1031168   ;;  %vm369_vm2 = vcmask (!%p288_p2), 957440  }
   0x6   : > { %291 = sbr.rel (%p288_p2) target bundleno = 1584 (0x630), region = 56  ;;  %s3168_s16 = smov (!%p288_p2), 126   ;;  %522 = vmatprep.mubr.f32.mxu0 (!%p288_p2), %v3174_v3  ;;  %1202 = vmatprep.mubr.f32.mxu1 (!%p288_p2), %v3174_v3  ;;  %v430_v22 = vld [vmem:[%s3736_s4] sm:$0xff] (!%p288_p2)  ;;  %v3176_v25 = vmov (!%p288_p2), 0   ;;  %vm380_vm3 = vcmask (!%p288_p2), 949248   ;;  %v2136_v37 = vld [vmem:[%s3740_s8 + $0x8] sm:$0xff] (!%p288_p2) }
   0x7   : > { %s3169_s17 = smov (!%p288_p2), 117   ;;  %s3170_s18 = smov (!%p288_p2), 116   ;;  %3146 = vset.pattern.permute.xlu0 (!%p288_p2), %v3176_v25  ;;  %v1657_v30 = vld [vmem:[%s3738_s6] sm:$0xff] (!%p288_p2)  ;;  %vm391_vm4 = vcmask (!%p288_p2), 941056   ;;  %vm436_vm5 = vcmask (!%p288_p2), 588800   ;;  %vm402_vm6 = vcmask (!%p288_p2), 867328  }
   0x8   : > { %s3171_s19 = smov (!%p288_p2), 115   ;;  %s3172_s20 = smov (!%p288_p2), 106   ;;  %v429_v39 = vld [vmem:[%s3735_s3] sm:$0xff] (!%p288_p2)  ;;  %vm413_vm7 = vcmask (!%p288_p2), 859136   ;;  %vm424_vm8 = vcmask (!%p288_p2), 850944   ;;  %vm1132_vm9 = vcmask (!%p288_p2), 64512  }
   0x9   : > { %s3173_s21 = smov (!%p288_p2), 105   ;;  %s3175_s22 = smov (!%p288_p2), 104   ;;  %v2135_v42 = vld [vmem:[%s3740_s8] sm:$0xff] (!%p288_p2)  ;;  %v438_v48 = vsel (!%p288_p2), %vm436_vm5, %v429_v39, 0 }
   0xa   : > { %v3335_v56 = vand.u32 (!%p288_p2), 4294901760, %v438_v48 }
   0xd   : > { %s3761_s10 = smov (!%p323_p3, %s2939_s10), 1 }
   0xe   : > { %s3113_s11 = smul.u32 24, %s3761_s10  ;;  %s2958_s24 = sshll.u32 %s3761_s10, 4 }
   0xf   : > { %s332_s27 = scalar_lea.vmem %s3741_s9, %s2958_s24 }
  0x10   : > { %s327_s14 = scalar_lea.vmem %s3732_s0, %s3113_s11 }
  0x11   : > { %v3247_v0 = vld [vmem:[%s327_s14 + $0x8] sm:$0xff]  ;;  %v3249_v1 = vld [vmem:[%s327_s14] sm:$0xff]  ;;  %v337_v2 = vld [vmem:[%s327_s14 + $0x10] sm:$0xff] }
  0x12   : > { %343 = vrot.lane.b32.xlu0 %v3247_v0, %s3167_s15  ;;  %341 = vrot.lane.b32.xlu1 %v3249_v1, %s3167_s15  ;;  %v440_v9 = vand.u32 4294901760, %v3247_v0  ;;  %v442_v12 = vand.u32 4294901760, %v3249_v1 }
  0x14   : > { %v3319_v43 = vsub.f32 %v3247_v0, %v440_v9  ;;  %v3323_v45 = vsub.f32 %v3249_v1, %v442_v12 }
  0x16   : > { %345 = vrot.lane.b32.xlu0 %v337_v2, %s3167_s15  ;;  %354 = vrot.lane.b32.xlu1 %v3247_v0, %s3168_s16  ;;  %v536_v55 = vand.u32 4294901760, %v3319_v43  ;;  %v542_v59 = vand.u32 4294901760, %v3323_v45 }
  0x1a   : > { %356 = vrot.lane.b32.xlu0 %v337_v2, %s3168_s16  ;;  %365 = vrot.lane.b32.xlu1 %v3247_v0, %s3169_s17 }
  0x1e   : > { %367 = vrot.lane.b32.xlu0 %v337_v2, %s3169_s17  ;;  %352 = vrot.lane.b32.xlu1 %v3249_v1, %s3168_s16 }
  0x22   : > { %363 = vrot.lane.b32.xlu0 %v3249_v1, %s3169_s17  ;;  %376 = vrot.lane.b32.xlu1 %v3247_v0, %s3170_s18 }
  0x26   : > { %378 = vrot.lane.b32.xlu0 %v337_v2, %s3170_s18  ;;  %387 = vrot.lane.b32.xlu1 %v3247_v0, %s3171_s19 }
  0x2a   : > { %389 = vrot.lane.b32.xlu0 %v337_v2, %s3171_s19  ;;  %374 = vrot.lane.b32.xlu1 %v3249_v1, %s3170_s18 }
  0x2e   : > { %385 = vrot.lane.b32.xlu0 %v3249_v1, %s3171_s19  ;;  %398 = vrot.lane.b32.xlu1 %v3247_v0, %s3172_s20 }
  0x32   : > { %400 = vrot.lane.b32.xlu0 %v337_v2, %s3172_s20  ;;  %409 = vrot.lane.b32.xlu1 %v3247_v0, %s3173_s21 }
  0x36   : > { %411 = vrot.lane.b32.xlu0 %v337_v2, %s3173_s21  ;;  %396 = vrot.lane.b32.xlu1 %v3249_v1, %s3172_s20 }
  0x3a   : > { %407 = vrot.lane.b32.xlu0 %v3249_v1, %s3173_s21  ;;  %420 = vrot.lane.b32.xlu1 %v3247_v0, %s3175_s22 }
  0x3e   : > { %422 = vrot.lane.b32.xlu0 %v337_v2, %s3175_s22  ;;  %418 = vrot.lane.b32.xlu1 %v3249_v1, %s3175_s22  ;;  %v3349_v1 = vsub.f32 %v3319_v43, %v536_v55  ;;  %v3352_v2 = vsub.f32 %v438_v48, %v3335_v56 }
  0x42   : > { %433 = vperm.xlu0 %3146, %v430_v22  }
  0x46   : > { %1660 = vperm.xlu0 %3146, %v1657_v30  }
  0x4a   : > { %2144 = vperm.xlu0 %3146, %v2136_v37  }
  0x4e   : > { %2139 = vperm.xlu0 %3146, %v2135_v42  }
  0x84   : > { %v344_v4 = vpop.permute.xlu0 %343  ;;  %v342_v5 = vpop.permute.xlu1 %341 }
  0x85   : > { %v348_v6 = vsel %vm347_vm0, %v342_v5, %v344_v4 }
  0x86   : > { %v446_v10 = vand.u32 4294901760, %v348_v6 }
  0x88   : > { %v346_v7 = vpop.permute.xlu0 %345  ;;  %v355_v8 = vpop.permute.xlu1 %354  ;;  %v3276_v17 = vpack.c.bf16 %v446_v10, %v442_v12  ;;  %v3331_v53 = vsub.f32 %v348_v6, %v446_v10 }
  0x89   : > { %v3270_v11 = vsel %vm347_vm0, %v344_v4, %v346_v7  ;;  %v3358_v4 = vsub.f32 %v3323_v45, %v542_v59 }
  0x8a   : > { %v444_v13 = vand.u32 4294901760, %v3270_v11  ;;  %v554_v0 = vand.u32 4294901760, %v3331_v53 }
  0x8c   : > { %v357_v14 = vpop.permute.xlu0 %356  ;;  %v366_v15 = vpop.permute.xlu1 %365  ;;  %v3274_v16 = vpack.c.bf16 %v444_v13, %v440_v9  ;;  %v3341_v60 = vsub.f32 %v3270_v11, %v444_v13  ;;  %v3372_v11 = vsub.f32 %v3331_v53, %v554_v0  ;;  %v538_v13 = vand.u32 4294901760, %v3349_v1 }
  0x8d   : > { %v3280_v18 = vsel %vm358_vm1, %v355_v8, %v357_v14  ;;  %v525_v14 = vand.u32 4294901760, %v3352_v2 }
  0x8e   : > { %2960 = vmatprep.subr.bf16.mxu0 %v3274_v16  ;;  %v448_v23 = vand.u32 4294901760, %v3280_v18  ;;  %v548_v5 = vand.u32 4294901760, %v3341_v60 }
  0x8f   : > { %2962 = vmatpush1.bf16.msra.mxu0 %v3276_v17  ;;  %v526_v37 = vsub.f32 %v3352_v2, %v525_v14 }
  0x90   : > { %v368_v19 = vpop.permute.xlu0 %367  ;;  %v353_v20 = vpop.permute.xlu1 %352 }
  0x91   : > { %v371_v21 = vsel %vm369_vm2, %v366_v15, %v368_v19  ;;  %v3289_v26 = vsel %vm358_vm1, %v353_v20, %v355_v8  ;;  %v3367_v8 = vsub.f32 %v3280_v18, %v448_v23  ;;  %v544_v18 = vand.u32 4294901760, %v3358_v4 }
  0x92   : > { %v452_v24 = vand.u32 4294901760, %v371_v21  ;;  %v450_v32 = vand.u32 4294901760, %v3289_v26 }
  0x93   : > { %v560_v25 = vand.u32 4294901760, %v3367_v8 }
  0x94   : > { %v364_v27 = vpop.permute.xlu0 %363  ;;  %v377_v28 = vpop.permute.xlu1 %376  ;;  %v3293_v29 = vpack.c.bf16 %v452_v24, %v448_v23  ;;  %v3361_v6 = vsub.f32 %v371_v21, %v452_v24  ;;  %v549_v24 = vsub.f32 %v3341_v60, %v548_v5 }
  0x95   : > { %v370_v31 = vsel %vm369_vm2, %v364_v27, %v366_v15  ;;  %v3391_v27 = vsub.f32 %v3289_v26, %v450_v32 }
  0x96   : > { %v454_v33 = vand.u32 4294901760, %v370_v31  ;;  %2964 = vmatprep.subr.bf16.mxu0 %v3293_v29  ;;  %v572_v21 = vand.u32 4294901760, %v3361_v6 }
  0x98   : > { %v379_v34 = vpop.permute.xlu0 %378  ;;  %v388_v35 = vpop.permute.xlu1 %387  ;;  %v3303_v36 = vpack.c.bf16 %v454_v33, %v450_v32  ;;  %v3377_v15 = vsub.f32 %v370_v31, %v454_v33  ;;  %v556_v33 = vand.u32 4294901760, %v3372_v11 }
  0x99   : > { %v3310_v38 = vsel %vm380_vm3, %v377_v28, %v379_v34 }
  0x9a   : > { %2966 = vmatpush1.bf16.msra.mxu0 %v3303_v36  ;;  %v456_v46 = vand.u32 4294901760, %v3310_v38  ;;  %v3743_v39 = vand.u32 4294901760, %v3377_v15 }
  0x9c   : > { %v390_v40 = vpop.permute.xlu0 %389  ;;  %v375_v41 = vpop.permute.xlu1 %374  ;;  %v3397_v34 = vsub.f32 %v3310_v38, %v456_v46 }
  0x9d   : > { %v393_v44 = vsel %vm391_vm4, %v388_v35, %v390_v40  ;;  %v3327_v49 = vsel %vm380_vm3, %v375_v41, %v377_v28 }
  0x9e   : > { %v460_v47 = vand.u32 4294901760, %v393_v44  ;;  %v458_v57 = vand.u32 4294901760, %v3327_v49  ;;  %v3744_v4 = vand.u32 4294901760, %v3397_v34 }
  0xa0   : > { %v386_v50 = vpop.permute.xlu0 %385  ;;  %v399_v51 = vpop.permute.xlu1 %398  ;;  %v3329_v52 = vpack.c.bf16 %v460_v47, %v456_v46  ;;  %v3381_v22 = vsub.f32 %v393_v44, %v460_v47  ;;  %v550_v44 = vand.u32 4294901760, %v549_v24  ;;  %v573_v46 = vsub.f32 %v3361_v6, %v572_v21 }
  0xa1   : > { %v392_v54 = vsel %vm391_vm4, %v386_v50, %v388_v35  ;;  %v566_v47 = vand.u32 4294901760, %v3391_v27  ;;  %v3415_v48 = vsub.f32 %v3327_v49, %v458_v57 }
  0xa2   : > { %v462_v58 = vand.u32 4294901760, %v392_v54  ;;  %2968 = vmatprep.subr.bf16.mxu0 %v3329_v52  ;;  %v3742_v41 = vand.u32 4294901760, %v3381_v22 }
  0xa3   : > { %v567_v24 = vsub.f32 %v3391_v27, %v566_v47 }
  0xa4   : > { %v401_v61 = vpop.permute.xlu0 %400  ;;  %v410_v62 = vpop.permute.xlu1 %409  ;;  %v3343_v63 = vpack.c.bf16 %v462_v58, %v458_v57  ;;  %v3404_v26 = vsub.f32 %v392_v54, %v462_v58  ;;  %v561_v58 = vsub.f32 %v3367_v8, %v560_v25  ;;  %v579_v57 = vsub.f32 %v3377_v15, %v3743_v39 }
  0xa5   : > { %v404_v7 = vsel %vm402_vm6, %v399_v51, %v401_v61 }
  0xa6   : > { %2970 = vmatpush1.bf16.msra.mxu0 %v3343_v63  ;;  %v464_v19 = vand.u32 4294901760, %v404_v7 }
  0xa8   : > { %v412_v9 = vpop.permute.xlu0 %411  ;;  %v397_v10 = vpop.permute.xlu1 %396  ;;  %v3422_v61 = vsub.f32 %v404_v7, %v464_v19 }
  0xa9   : > { %v415_v12 = vsel %vm413_vm7, %v410_v62, %v412_v9  ;;  %v403_v23 = vsel %vm402_vm6, %v397_v10, %v399_v51  ;;  %v3745_v9 = vand.u32 4294901760, %v3404_v26 }
  0xaa   : > { %v468_v20 = vand.u32 4294901760, %v415_v12  ;;  %v466_v32 = vand.u32 4294901760, %v403_v23 }
  0xac   : > { %v408_v28 = vpop.permute.xlu0 %407  ;;  %v421_v30 = vpop.permute.xlu1 %420  ;;  %v3393_v31 = vpack.c.bf16 %v468_v20, %v464_v19  ;;  %v3408_v42 = vsub.f32 %v415_v12, %v468_v20  ;;  %v527_v12 = vand.u32 4294901760, %v526_v37  ;;  %v574_v19 = vand.u32 4294901760, %v573_v46 }
  0xad   : > { %v414_v35 = vsel %vm413_vm7, %v408_v28, %v410_v62  ;;  %v597_v20 = vsub.f32 %v3381_v22, %v3742_v41  ;;  %v590_v28 = vand.u32 4294901760, %v3415_v48  ;;  %v2975_v37 = vpack.c.bf16 %v550_v44, %v538_v13 }
  0xae   : > { %v470_v40 = vand.u32 4294901760, %v414_v35  ;;  %2972 = vmatprep.subr.bf16.mxu0 %v3393_v31  ;;  %v3746_v7 = vand.u32 4294901760, %v3408_v42  ;;  %v562_v46 = vand.u32 4294901760, %v561_v58  ;;  %v603_v41 = vsub.f32 %v3404_v26, %v3745_v9 }
  0xaf   : > { %v598_v44 = vand.u32 4294901760, %v597_v20  ;;  %v591_v9 = vsub.f32 %v3415_v48, %v590_v28 }
  0xb0   : > { %v423_v50 = vpop.permute.xlu0 %422  ;;  %v419_v51 = vpop.permute.xlu1 %418  ;;  %v3417_v54 = vpack.c.bf16 %v470_v40, %v466_v32  ;;  %v3431_v10 = vsub.f32 %v414_v35, %v470_v40  ;;  %v3748_v40 = vand.u32 4294901760, %v3422_v61  ;;  %v2979_v13 = vpack.c.bf16 %v574_v19, %v562_v46 }
  0xb1   : > { %v426_v62 = vsel %vm424_vm8, %v421_v30, %v423_v50  ;;  %v425_v1 = vsel %vm424_vm8, %v419_v51, %v421_v30  ;;  %v3444_v30 = vsub.f32 %v403_v23, %v466_v32  ;;  %v585_v50 = vsub.f32 %v3397_v34, %v3744_v4 }
  0xb2   : > { %v3433_v11 = vand.u32 4294901760, %v426_v62  ;;  %2974 = vmatpush1.bf16.msra.mxu0 %v3417_v54  ;;  %v3446_v35 = vand.u32 4294901760, %v425_v1  ;;  %v580_v51 = vand.u32 4294901760, %v579_v57  ;;  %v3747_v23 = vand.u32 4294901760, %v3431_v10 }
  0xb3   : > { %v2977_v32 = vpack.c.bf16 %v556_v33, %v544_v18  ;;  %v621_v58 = vsub.f32 %v3408_v42, %v3746_v7  ;;  %v568_v57 = vand.u32 4294901760, %v567_v24  ;;  %v614_v4 = vand.u32 4294901760, %v3444_v30 }
  0xb4   : > { %473 = vmatprep.subr.mxu0 %v3433_v11  ;;  %v3459_v39 = vsub.f32 %v426_v62, %v3433_v11  ;;  %v586_v18 = vand.u32 4294901760, %v585_v50  ;;  %v609_v33 = vsub.f32 %v3422_v61, %v3748_v40  ;;  %v604_v62 = vand.u32 4294901760, %v603_v41 }
  0xb5   : > { %v3476_v19 = vsub.f32 %v425_v1, %v3446_v35  ;;  %v2981_v20 = vpack.c.bf16 %v580_v51, %v568_v57  ;;  %v615_v50 = vsub.f32 %v3444_v30, %v614_v4 }
  0xb6   : > { %475 = vmatpush1.msra.mxu0 %v3446_v35  ;;  %v2983_v24 = vpack.c.bf16 %v598_v44, %v586_v18  ;;  %v632_v46 = vand.u32 4294901760, %v3459_v39  ;;  %v610_v41 = vand.u32 4294901760, %v609_v33  ;;  %v2991_v18 = vpack.c.bf16 %v3341_v60, %v3319_v43 }
  0xb7   : > { %2976 = vmatprep.subr.bf16.mxu0 %v2975_v37  ;;  %528 = vmatmul.mubr.f32.vlgmr.msra.gmra.mrb[0].mxu0 %v527_v12  ;;  %v627_v12 = vsub.f32 %v3431_v10, %v3747_v23  ;;  %v622_v37 = vand.u32 4294901760, %v621_v58  ;;  %v638_v7 = vand.u32 4294901760, %v3476_v19  ;;  %v616_v51 = vand.u32 4294901760, %v615_v50 }
  0xb8   : > { %2978 = vmatpush1.bf16.msra.mxu0 %v2977_v32  ;;  %688 = vmatprep.mubr.f32.mxu0 %v3174_v3  ;;  %v592_v32 = vand.u32 4294901760, %v591_v9  ;;  %v633_v1 = vsub.f32 %v3459_v39, %v632_v46  ;;  %v2993_v33 = vpack.c.bf16 %v3331_v53, %v3323_v45  ;;  %v3025_v50 = vpack.c.bf16 %v554_v0, %v542_v59 }
  0xb9   : > { %2980 = vmatprep.subr.bf16.mxu0 %v2979_v13  ;;  %v628_v13 = vand.u32 4294901760, %v627_v12  ;;  %v2987_v40 = vpack.c.bf16 %v622_v37, %v610_v41  ;;  %v639_v44 = vsub.f32 %v3476_v19, %v638_v7  ;;  %v3001_v12 = vpack.c.bf16 %v3404_v26, %v3415_v48 }
  0xba   : > { %v2985_v23 = vpack.c.bf16 %v604_v62, %v592_v32  ;;  %v634_v9 = vand.u32 4294901760, %v633_v1  ;;  %v2999_v62 = vpack.c.bf16 %v3381_v22, %v3397_v34  ;;  %v3023_v37 = vpack.c.bf16 %v548_v5, %v536_v55 }
  0xbb   : > { %v2989_v58 = vpack.c.bf16 %v628_v13, %v616_v51  ;;  %v640_v57 = vand.u32 4294901760, %v639_v44  ;;  %v3027_v32 = vpack.c.bf16 %v572_v21, %v560_v25  ;;  %v3749_v43 = vand.u32 4294901760, %v3377_v15  ;;  %v1115_v25 = vld [vmem:[%s3733_s1] sm:$0x3] }
  0xbc   : > { %2982 = vmatpush1.bf16.msra.mxu0 %v2981_v20  ;;  %v3003_v20 = vpack.c.bf16 %v3408_v42, %v3422_v61  ;;  %v3750_v53 = vand.u32 4294901760, %v3397_v34  ;;  %v3751_v55 = vand.u32 4294901760, %v3381_v22  ;;  %v3752_v60 = vand.u32 4294901760, %v3404_v26 }
  0xbd   : > { %2984 = vmatprep.subr.bf16.mxu0 %v2983_v24  ;;  %v3005_v24 = vpack.c.bf16 %v3431_v10, %v3444_v30  ;;  %v3029_v45 = vpack.c.bf16 %v3749_v43, %v566_v47  ;;  %v3754_v5 = vand.u32 4294901760, %v3408_v42 }
  0xbe   : > { %v3031_v59 = vpack.c.bf16 %v3751_v55, %v3750_v53  ;;  %v3033_v0 = vpack.c.bf16 %v3752_v60, %v590_v28 }
  0xc0   : > { %2986 = vmatpush1.bf16.msra.mxu0 %v2985_v23  ;;  %v2997_v23 = vpack.c.bf16 %v3377_v15, %v3391_v27 }
  0xc1   : > { %2988 = vmatprep.subr.bf16.mxu0 %v2987_v40  ;;  %v2995_v40 = vpack.c.bf16 %v3361_v6, %v3367_v8  ;;  %v3755_v8 = vand.u32 4294901760, %v3431_v10  ;;  %v434_v21 = vpop.permute.xlu0 %433 }
  0xc4   : > { %2990 = vmatpush1.bf16.msra.mxu0 %v2989_v58 }
  0xc5   : > { %635 = vmatprep.subr.mxu0 %v634_v9 }
  0xc8   : > { %641 = vmatpush1.msra.mxu0 %v640_v57 }
  0xc9   : > { %2992 = vmatprep.subr.bf16.mxu0 %v2991_v18  ;;  %690 = vmatmul.mubr.f32.vlgmr.msra.gmra.mrb[0].mxu0 %v3335_v56 }
  0xca   : > { %2994 = vmatpush1.bf16.msra.mxu0 %v2993_v33  ;;  %796 = vmatprep.mubr.f32.mxu0 %v3174_v3 }
  0xcb   : > { %2996 = vmatprep.subr.bf16.mxu0 %v2995_v40 }
  0xce   : > { %2998 = vmatpush1.bf16.msra.mxu0 %v2997_v23 }
  0xcf   : > { %3000 = vmatprep.subr.bf16.mxu0 %v2999_v62 }
  0xd2   : > { %3002 = vmatpush1.bf16.msra.mxu0 %v3001_v12 }
  0xd3   : > { %3004 = vmatprep.subr.bf16.mxu0 %v3003_v20 }
  0xd6   : > { %3006 = vmatpush1.bf16.msra.mxu0 %v3005_v24 }
  0xd7   : > { %746 = vmatprep.subr.mxu0 %v3459_v39 }
  0xda   : > { %749 = vmatpush1.msra.mxu0 %v3476_v19 }
  0xdb   : > { %3008 = vmatprep.subr.bf16.mxu0 %v3274_v16  ;;  %799 = vmatmul.mubr.f32.vlgmr.msra.gmra.mrb[0].mxu0 %v3352_v2  ;;  %v3753_v2 = vand.u32 4294901760, %v3422_v61 }
  0xdc   : > { %3010 = vmatpush1.bf16.msra.mxu0 %v3276_v17  ;;  %887 = vmatprep.mubr.f32.mxu0 %v3174_v3 }
  0xdd   : > { %3012 = vmatprep.subr.bf16.mxu0 %v3293_v29  ;;  %v3035_v6 = vpack.c.bf16 %v3754_v5, %v3753_v2 }
  0xe0   : > { %3014 = vmatpush1.bf16.msra.mxu0 %v3303_v36 }
  0xe1   : > { %3016 = vmatprep.subr.bf16.mxu0 %v3329_v52 }
  0xe4   : > { %3018 = vmatpush1.bf16.msra.mxu0 %v3343_v63 }
  0xe5   : > { %3020 = vmatprep.subr.bf16.mxu0 %v3393_v31 }
  0xe8   : > { %3022 = vmatpush1.bf16.msra.mxu0 %v3417_v54 }
  0xe9   : > { %838 = vmatprep.subr.mxu0 %v3433_v11 }
  0xec   : > { %840 = vmatpush1.msra.mxu0 %v3446_v35 }
  0xed   : > { %3024 = vmatprep.subr.bf16.mxu0 %v3023_v37  ;;  %891 = vmatmul.mubr.f32.vlgmr.msra.gmra.mrb[0].mxu0 %v525_v14  ;;  %v3037_v14 = vpack.c.bf16 %v3755_v8, %v614_v4 }
  0xee   : > { %3026 = vmatpush1.bf16.msra.mxu0 %v3025_v50  ;;  %1015 = vmatprep.mubr.f32.mxu0 %v3174_v3 }
  0xef   : > { %3028 = vmatprep.subr.bf16.mxu0 %v3027_v32 }
  0xf2   : > { %3030 = vmatpush1.bf16.msra.mxu0 %v3029_v45 }
  0xf3   : > { %3032 = vmatprep.subr.bf16.mxu0 %v3031_v59 }
  0xf6   : > { %3034 = vmatpush1.bf16.msra.mxu0 %v3033_v0 }
  0xf7   : > { %3036 = vmatprep.subr.bf16.mxu0 %v3035_v6 }
  0xfa   : > { %3038 = vmatpush1.bf16.msra.mxu0 %v3037_v14 }
  0xfb   : > { %964 = vmatprep.subr.mxu0 %v632_v46 }
  0xfe   : > { %968 = vmatpush1.msra.mxu0 %v638_v7 }
  0xff   : > { %3040 = vmatprep.subr.bf16.mxu0 %v3274_v16  ;;  %1017 = vmatmul.mubr.f32.vlgmr.msra.gmra.mrb[0].mxu0 %v3335_v56  ;;  %v1131_v16 = vld [vmem:[%s3734_s2] sm:$0xff] }
 0x100   : > { %3042 = vmatpush1.bf16.msra.mxu0 %v3276_v17  ;;  %1105 = vmatprep.mubr.f32.mxu0 %v3174_v3  ;;  %v1119_v17 = vlaneseq }
 0x101   : > { %3044 = vmatprep.subr.bf16.mxu0 %v3293_v29  ;;  %v1134_v29 = vsel %vm1132_vm9, %v1131_v16, 0 }
 0x104   : > { %3046 = vmatpush1.bf16.msra.mxu0 %v3303_v36  ;;  %v1203_v36 = vand.u32 4294901760, %v1134_v29 }
 0x105   : > { %3048 = vmatprep.subr.bf16.mxu0 %v3329_v52  ;;  %v1120_v52 = vshrl.u32 %v1119_v17, 7 }
 0x107   : > { %v1121_v15 = vsub.s32 0, %v1120_v52  ;;  %v1125_v27 = vsub.s32 1, %v1120_v52  ;;  %vm1607_vm10 = vcmp.lt.s32.totalorder %v1120_v52, 4 }
 0x108   : > { %3050 = vmatpush1.bf16.msra.mxu0 %v3343_v63  ;;  %v1204_v63 = vsub.f32 %v1134_v29, %v1203_v36  ;;  %v2947_v18 = vsel %vm1607_vm10, 1.0, %v3174_v3 }
 0x109   : > { %3052 = vmatprep.subr.bf16.mxu0 %v3393_v31  ;;  %v1122_v42 = vrot.slane %v1115_v25, %v1121_v15  ;;  %v1126_v48 = vrot.slane %v1115_v25, %v1125_v27  ;;  %v3599_v33 = vsub.f32 1.0, %v2947_v18  ;;  %v1620_v23 = vmul.f32 -1e+30, %v2947_v18 }
 0x10a   : > { %v1205_v39 = vand.u32 4294901760, %v1204_v63 }
 0x10b   : > { %v1611_v40 = vmul.f32 -1e+30, %v3599_v33 }
 0x10c   : > { %3054 = vmatpush1.bf16.msra.mxu0 %v3417_v54  ;;  %v1206_v4 = vsub.f32 %v1204_v63, %v1205_v39 }
 0x10d   : > { %1056 = vmatprep.subr.mxu0 %v3433_v11 }
 0x10e   : > { %v1207_v30 = vand.u32 4294901760, %v1206_v4  ;;  %v1656_v4 = vld [vmem:[%s3737_s5] sm:$0xff] }
 0x110   : > { %1058 = vmatpush1.msra.mxu0 %v3446_v35 }
 0x111   : > { %1107 = vmatmul.mubr.f32.vlgmr.msra.gmra.mrb[0].mxu0 %v3335_v56 }
 0x1e4   : > { %v1108_v22 = vpop.f32.mrb[0].mxu0 }
 0x1e5   : > { %v3580_v56 = vadd.f32 %v1108_v22, %v434_v21  ;;  %v1110_v31 = vpop.f32.mrb[1].mxu0 }
 0x1e6   : > { %v3582_v34 = vadd.f32 %v1110_v31, %v434_v21 }
 0x1e7   : > { %v1113_v26 = vmax.f32 %v3580_v56, 0.0 }
 0x1e8   : > { %v1114_v47 = vmax.f32 %v3582_v34, 0.0 }
 0x1e9   : > { %v1116_v54 = vsub.f32 %v1113_v26, %v3327_v49 }
 0x1ea   : > { %v1117_v61 = vsub.f32 %v1114_v47, %v3310_v38 }
 0x1eb   : > { %v1129_v10 = vmul.f32 %v1122_v42, %v1116_v54 }
 0x1ec   : > { %v1130_v11 = vmul.f32 %v1126_v48, %v1117_v61 }
 0x1ed   : > { %v1138_v7 = vand.u32 4294901760, %v1129_v10 }
 0x1ee   : > { %v1136_v28 = vand.u32 4294901760, %v1130_v11 }
 0x1ef   : > { %v1221_v35 = vsub.f32 %v1129_v10, %v1138_v7 }
 0x1f0   : > { %v1215_v19 = vsub.f32 %v1130_v11, %v1136_v28  ;;  %1137 = vmatprep.subr.mxu1 %v1136_v28 }
 0x1f1   : > { %1139 = vmatpush1.msra.mxu1 %v1138_v7  ;;  %v1222_v46 = vand.u32 4294901760, %v1221_v35 }
 0x1f2   : > { %1208 = vmatmul.mubr.f32.vlgmr.msra.gmra.mrb[0].mxu1 %v1207_v30  ;;  %v1216_v41 = vand.u32 4294901760, %v1215_v19 }
 0x1f3   : > { %v1223_v13 = vsub.f32 %v1221_v35, %v1222_v46  ;;  %1288 = vmatprep.mubr.f32.mxu1 %v3174_v3 }
 0x1f4   : > { %v1217_v1 = vsub.f32 %v1215_v19, %v1216_v41 }
 0x1f5   : > { %v1224_v44 = vand.u32 4294901760, %v1223_v13 }
 0x1f6   : > { %v1218_v51 = vand.u32 4294901760, %v1217_v1 }
 0x1f8   : > { %1219 = vmatprep.subr.mxu1 %v1218_v51 }
 0x1f9   : > { %1225 = vmatpush1.msra.mxu1 %v1224_v44 }
 0x1fa   : > { %1290 = vmatmul.mubr.f32.vlgmr.msra.gmra.mrb[0].mxu1 %v1203_v36  ;;  %1298 = vmatprep.subr.mxu1 %v1215_v19 }
 0x1fb   : > { %1301 = vmatpush1.msra.mxu1 %v1221_v35  ;;  %1364 = vmatprep.mubr.f32.mxu1 %v3174_v3 }
 0x1fc   : > { %1374 = vmatprep.subr.mxu1 %v1136_v28 }
 0x202   : > { %1367 = vmatmul.mubr.f32.vlgmr.msra.gmra.mrb[0].mxu1 %v1204_v63 }
 0x203   : > { %1376 = vmatpush1.msra.mxu1 %v1138_v7  ;;  %1439 = vmatprep.mubr.f32.mxu1 %v3174_v3 }
 0x204   : > { %1452 = vmatprep.subr.mxu1 %v1216_v41 }
 0x20a   : > { %1443 = vmatmul.mubr.f32.vlgmr.msra.gmra.mrb[0].mxu1 %v1205_v39 }
 0x20b   : > { %1456 = vmatpush1.msra.mxu1 %v1222_v46  ;;  %1519 = vmatprep.mubr.f32.mxu1 %v3174_v3 }
 0x20c   : > { %1528 = vmatprep.subr.mxu1 %v1136_v28  ;;  %v1664_v28 = vsel %vm1132_vm9, %v1656_v4, 0  ;;  %v2671_v4 = vmul.f32 1.5707964, %v3599_v33 }
 0x20d   : > { %v1733_v30 = vand.u32 4294901760, %v1664_v28 }
 0x20f   : > { %v1734_v35 = vsub.f32 %v1664_v28, %v1733_v30 }
 0x211   : > { %v1735_v19 = vand.u32 4294901760, %v1734_v35 }
 0x212   : > { %1521 = vmatmul.mubr.f32.vlgmr.msra.gmra.mrb[0].mxu1 %v1203_v36 }
 0x213   : > { %1530 = vmatpush1.msra.mxu1 %v1138_v7  ;;  %1593 = vmatprep.mubr.f32.mxu1 %v3174_v3  ;;  %v1736_v51 = vsub.f32 %v1734_v35, %v1735_v19 }
 0x21a   : > { %1595 = vmatmul.mubr.f32.vlgmr.msra.gmra.mrb[0].mxu1 %v1203_v36 }
 0x21b   : > { %1732 = vmatprep.mubr.f32.mxu1 %v3174_v3 }
 0x2ed   : > { %v1596_v58 = vpop.f32.mrb[0].mxu1 }
 0x2ee   : > { %v1598_v9 = vpop.f32.mrb[1].mxu1 }
 0x2ef   : > { %v1601_v57 = vadd.f32 %v1598_v9, %v1596_v58 }
 0x2f1   : > { %1602 = vadd.xlane.f32.xlu1 %v1601_v57 }
 0x37e   : > { %v1603_v62 = vpop.xlane.xlu1 %1602 }
 0x37f   : > { %v1604_v12 = vmul.f32 0.0069444445, %v1603_v62 }
 0x381   : > { %v1612_v20 = vadd.f32 %v1611_v40, %v1604_v12  ;;  %v1621_v24 = vadd.f32 %v1620_v23, %v1604_v12 }
 0x383   : > { %v1613_v37 = vrot.slane %v1612_v20, 4  ;;  %v1622_v50 = vrot.slane %v1621_v24, 4 }
 0x385   : > { %v1614_v32 = vmax.f32 %v1612_v20, %v1613_v37  ;;  %v1623_v43 = vmax.f32 %v1621_v24, %v1622_v50  ;;  %v2134_v20 = vld [vmem:[%s3739_s7 + $0x8] sm:$0xff] }
 0x386   : > { %v2151_v37 = vsel %vm1132_vm9, %v2134_v20, 0 }
 0x387   : > { %v1615_v45 = vrot.slane %v1614_v32, 2  ;;  %v1624_v53 = vrot.slane %v1623_v43, 2 }
 0x389   : > { %v1616_v55 = vmax.f32 %v1614_v32, %v1615_v45  ;;  %v1625_v59 = vmax.f32 %v1623_v43, %v1624_v53  ;;  %v2231_v32 = vand.u32 4294901760, %v2151_v37  ;;  %v1661_v53 = vpop.permute.xlu0 %1660 }
 0x38b   : > { %v1617_v60 = vrot.slane %v1616_v55, 1  ;;  %v1626_v0 = vrot.slane %v1625_v59, 1  ;;  %v2232_v45 = vsub.f32 %v2151_v37, %v2231_v32 }
 0x38d   : > { %v1618_v2 = vmax.f32 %v1616_v55, %v1617_v60  ;;  %v1627_v5 = vmax.f32 %v1625_v59, %v1626_v0 }
 0x38f   : > { %v1619_v6 = vmul.f32 %v2947_v18, %v1618_v2  ;;  %v1628_v8 = vmul.f32 %v1627_v5, %v3599_v33  ;;  %v2233_v5 = vand.u32 4294901760, %v2232_v45 }
 0x391   : > { %v1629_v14 = vadd.f32 %v1628_v8, %v1619_v6 }
 0x393   : > { %v1630_v16 = vsub.f32 %v1604_v12, %v1629_v14 }
 0x395   : > { %v1631_v17 = vmul.f32 1.442695, %v1630_v16 }
 0x397   : > { %3147 = vpow2.f32 %v1631_v17 }
 0x3a1   : > { %v3148_v29 = vpop.eup %3147 }
 0x3a2   : > { %v1633_v36 = vmul.f32 %v3148_v29, %v2947_v18  ;;  %v1641_v52 = vmul.f32 %v3148_v29, %v3599_v33 }
 0x3a4   : > { %v1634_v63 = vrot.slane %v1633_v36, 4  ;;  %v1642_v15 = vrot.slane %v1641_v52, 4 }
 0x3a6   : > { %v1635_v21 = vadd.f32 %v1634_v63, %v1633_v36  ;;  %v1643_v22 = vadd.f32 %v1642_v15, %v1641_v52 }
 0x3a8   : > { %v1636_v25 = vrot.slane %v1635_v21, 2  ;;  %v1644_v27 = vrot.slane %v1643_v22, 2 }
 0x3aa   : > { %v1637_v31 = vadd.f32 %v1636_v25, %v1635_v21  ;;  %v1645_v39 = vadd.f32 %v1644_v27, %v1643_v22 }
 0x3ac   : > { %v1638_v42 = vrot.slane %v1637_v31, 1  ;;  %v1646_v48 = vrot.slane %v1645_v39, 1 }
 0x3ae   : > { %v1639_v54 = vadd.f32 %v1638_v42, %v1637_v31  ;;  %v1647_v61 = vadd.f32 %v1646_v48, %v1645_v39  ;;  %v2145_v48 = vpop.permute.xlu0 %2144 }
 0x3b0   : > { %v1640_v10 = vmul.f32 %v2947_v18, %v1639_v54  ;;  %v1648_v11 = vmul.f32 %v1647_v61, %v3599_v33  ;;  %v1737_v18 = vand.u32 4294901760, %v1736_v51 }
 0x3b2   : > { %v1649_v7 = vadd.f32 %v1648_v11, %v1640_v10 }
 0x3b4   : > { %3149 = vrcp.f32 %v1649_v7 }
 0x3be   : > { %v3150_v46 = vpop.eup %3149 }
 0x3bf   : > { %v1651_v41 = vmul.f32 %v3150_v46, %v3148_v29  ;;  %v2234_v29 = vsub.f32 %v2232_v45, %v2233_v5 }
 0x3c1   : > { %v1653_v13 = vmul.f32 %v1651_v41, %v1114_v47  ;;  %v1652_v1 = vmul.f32 %v1651_v41, %v1113_v26  ;;  %v2235_v15 = vand.u32 4294901760, %v2234_v29 }
 0x3c3   : > { %v1655_v44 = vadd.f32 %v1653_v13, %v3310_v38  ;;  %v1654_v58 = vadd.f32 %v1652_v1, %v3327_v49  ;;  %v2133_v38 = vld [vmem:[%s3739_s7] sm:$0xff] }
 0x3c4   : > { %v2148_v49 = vsel %vm1132_vm9, %v2133_v38, 0 }
 0x3c5   : > { %v1666_v9 = vand.u32 4294901760, %v1655_v44  ;;  %v1668_v57 = vand.u32 4294901760, %v1654_v58  ;;  %v2220_v24 = vand.u32 4294901760, %v2148_v49 }
 0x3c7   : > { %1667 = vmatprep.subr.mxu1 %v1666_v9  ;;  %v1751_v40 = vsub.f32 %v1654_v58, %v1668_v57  ;;  %v1745_v23 = vsub.f32 %v1655_v44, %v1666_v9  ;;  %v2221_v50 = vsub.f32 %v2148_v49, %v2220_v24 }
 0x3c8   : > { %1669 = vmatpush1.msra.mxu1 %v1668_v57 }
 0x3c9   : > { %1738 = vmatmul.mubr.f32.vlgmr.msra.gmra.mrb[2].mxu1 %v1737_v18  ;;  %v1746_v62 = vand.u32 4294901760, %v1745_v23  ;;  %v1752_v12 = vand.u32 4294901760, %v1751_v40  ;;  %v2222_v43 = vand.u32 4294901760, %v2221_v50 }
 0x3ca   : > { %1818 = vmatprep.mubr.f32.mxu1 %v3174_v3 }
 0x3cb   : > { %v1747_v34 = vsub.f32 %v1745_v23, %v1746_v62  ;;  %v1753_v56 = vsub.f32 %v1751_v40, %v1752_v12  ;;  %v2223_v2 = vsub.f32 %v2221_v50, %v2222_v43 }
 0x3cd   : > { %v1748_v26 = vand.u32 4294901760, %v1747_v34  ;;  %v1754_v47 = vand.u32 4294901760, %v1753_v56  ;;  %v2224_v17 = vand.u32 4294901760, %v2223_v2 }
 0x3cf   : > { %1749 = vmatprep.subr.mxu1 %v1748_v26 }
 0x3d0   : > { %1755 = vmatpush1.msra.mxu1 %v1754_v47  ;;  %v3177_v47 = vmov 683565275  }
 0x3d1   : > { %1820 = vmatmul.mubr.f32.vlgmr.msra.gmra.mrb[2].mxu1 %v1733_v30  ;;  %1828 = vmatprep.subr.mxu1 %v1745_v23 }
 0x3d2   : > { %1831 = vmatpush1.msra.mxu1 %v1751_v40  ;;  %1894 = vmatprep.mubr.f32.mxu1 %v3174_v3 }
 0x3d3   : > { %1904 = vmatprep.subr.mxu1 %v1666_v9 }
 0x3d9   : > { %1897 = vmatmul.mubr.f32.vlgmr.msra.gmra.mrb[2].mxu1 %v1734_v35 }
 0x3da   : > { %1906 = vmatpush1.msra.mxu1 %v1668_v57  ;;  %1969 = vmatprep.mubr.f32.mxu1 %v3174_v3 }
 0x3db   : > { %1982 = vmatprep.subr.mxu1 %v1746_v62 }
 0x3e1   : > { %1973 = vmatmul.mubr.f32.vlgmr.msra.gmra.mrb[2].mxu1 %v1735_v19 }
 0x3e2   : > { %1986 = vmatpush1.msra.mxu1 %v1752_v12  ;;  %2049 = vmatprep.mubr.f32.mxu1 %v3174_v3 }
 0x3e3   : > { %2058 = vmatprep.subr.mxu1 %v1666_v9 }
 0x3e9   : > { %2051 = vmatmul.mubr.f32.vlgmr.msra.gmra.mrb[2].mxu1 %v1733_v30 }
 0x3ea   : > { %2060 = vmatpush1.msra.mxu1 %v1668_v57  ;;  %2123 = vmatprep.mubr.f32.mxu1 %v3174_v3 }
 0x3f1   : > { %2125 = vmatmul.mubr.f32.vlgmr.msra.gmra.mrb[2].mxu1 %v1733_v30 }
 0x3f2   : > { %2219 = vmatprep.mubr.f32.mxu1 %v3174_v3 }
 0x4c4   : > { %v2126_v55 = vpop.f32.mrb[2].mxu1 }
 0x4c5   : > { %v3057_v59 = vadd.f32 %v2126_v55, %v1661_v53  ;;  %v2128_v60 = vpop.f32.mrb[3].mxu1 }
 0x4c6   : > { %v3058_v0 = vadd.f32 %v2128_v60, %v1661_v53  ;;  %v3181_v53 = vmov 920167782  }
 0x4c7   : > { %v2131_v6 = vmax.f32 %v3057_v59, 0.0 }
 0x4c8   : > { %v2132_v8 = vmax.f32 %v3058_v0, 0.0 }
 0x4c9   : > { %v2155_v14 = vand.u32 4294901760, %v2131_v6 }
 0x4ca   : > { %v2153_v16 = vand.u32 4294901760, %v2132_v8 }
 0x4cb   : > { %v2249_v36 = vsub.f32 %v2131_v6, %v2155_v14  ;;  %v3182_v6 = vmov 1326507024  }
 0x4cc   : > { %v2243_v52 = vsub.f32 %v2132_v8, %v2153_v16  ;;  %2154 = vmatprep.subr.mxu1 %v2153_v16 }
 0x4cd   : > { %v2250_v63 = vand.u32 4294901760, %v2249_v36  ;;  %2156 = vmatpush1.msra.mxu1 %v2155_v14 }
 0x4ce   : > { %2225 = vmatmul.mubr.f32.vlgmr.msra.gmra.mrb[4].mxu1 %v2224_v17  ;;  %v2244_v21 = vand.u32 4294901760, %v2243_v52 }
 0x4cf   : > { %v2251_v22 = vsub.f32 %v2249_v36, %v2250_v63  ;;  %2230 = vmatprep.mubr.f32.mxu1 %v3174_v3 }
 0x4d0   : > { %v2245_v25 = vsub.f32 %v2243_v52, %v2244_v21 }
 0x4d1   : > { %v2252_v31 = vand.u32 4294901760, %v2251_v22 }
 0x4d2   : > { %2236 = vmatmul.mubr.f32.gmra.mrb[6].mxu1 %v2235_v15  ;;  %v2246_v27 = vand.u32 4294901760, %v2245_v25 }
 0x4d3   : > { %2316 = vmatprep.mubr.f32.mxu1 %v3174_v3 }
 0x4d4   : > { %2247 = vmatprep.subr.mxu1 %v2246_v27 }
 0x4d5   : > { %2253 = vmatpush1.msra.mxu1 %v2252_v31 }
 0x4d6   : > { %2318 = vmatmul.mubr.f32.vlgmr.msra.gmra.mrb[4].mxu1 %v2220_v24  ;;  %2333 = vmatprep.subr.mxu1 %v2243_v52 }
 0x4d7   : > { %2336 = vmatpush1.msra.mxu1 %v2249_v36  ;;  %2323 = vmatprep.mubr.f32.mxu1 %v3174_v3 }
 0x4d8   : > { %2417 = vmatprep.subr.mxu1 %v2153_v16 }
 0x4da   : > { %2325 = vmatmul.mubr.f32.gmra.mrb[6].mxu1 %v2231_v32 }
 0x4db   : > { %2399 = vmatprep.mubr.f32.mxu1 %v3174_v3 }
 0x4de   : > { %2402 = vmatmul.mubr.f32.vlgmr.msra.gmra.mrb[4].mxu1 %v2221_v50  ;;  %v3179_v50 = vmov 2131351028  }
 0x4df   : > { %2419 = vmatpush1.msra.mxu1 %v2155_v14  ;;  %2407 = vmatprep.mubr.f32.mxu1 %v3174_v3 }
 0x4e0   : > { %2504 = vmatprep.subr.mxu1 %v2244_v21 }
 0x4e2   : > { %2410 = vmatmul.mubr.f32.gmra.mrb[6].mxu1 %v2232_v45 }
 0x4e3   : > { %2482 = vmatprep.mubr.f32.mxu1 %v3174_v3 }
 0x4e6   : > { %2486 = vmatmul.mubr.f32.vlgmr.msra.gmra.mrb[4].mxu1 %v2222_v43  ;;  %v3180_v43 = vmov 2102212464  }
 0x4e7   : > { %2508 = vmatpush1.msra.mxu1 %v2250_v63  ;;  %2491 = vmatprep.mubr.f32.mxu1 %v3174_v3 }
 0x4e8   : > { %2587 = vmatprep.subr.mxu1 %v2153_v16 }
 0x4ea   : > { %2495 = vmatmul.mubr.f32.gmra.mrb[6].mxu1 %v2233_v5 }
 0x4eb   : > { %2571 = vmatprep.mubr.f32.mxu1 %v3174_v3 }
 0x4ee   : > { %2573 = vmatmul.mubr.f32.vlgmr.msra.gmra.mrb[4].mxu1 %v2220_v24 }
 0x4ef   : > { %2589 = vmatpush1.msra.mxu1 %v2155_v14  ;;  %2578 = vmatprep.mubr.f32.mxu1 %v3174_v3 }
 0x4f2   : > { %2580 = vmatmul.mubr.f32.gmra.mrb[6].mxu1 %v2231_v32 }
 0x4f3   : > { %2652 = vmatprep.mubr.f32.mxu1 %v3174_v3 }
 0x4f6   : > { %2654 = vmatmul.mubr.f32.vlgmr.msra.gmra.mrb[4].mxu1 %v2220_v24  ;;  %v3178_v24 = vmov 2475754826  }
 0x4f7   : > { %2659 = vmatprep.mubr.f32.mxu1 %v3174_v3 }
 0x4fa   : > { %2661 = vmatmul.mubr.f32.gmra.mrb[6].mxu1 %v2231_v32 }
 0x5c9   : > { %v3640_v39 = vpop.f32.mrb[4].mxu1 }
 0x5ca   : > { %v3642_v42 = vpop.f32.mrb[5].mxu1 }
 0x5cd   : > { %v2662_v54 = vpop.f32.mrb[6].mxu1 }
 0x5ce   : > { %v3061_v61 = vadd.f32 %v2662_v54, %v2145_v48  ;;  %v2664_v10 = vpop.f32.mrb[7].mxu1 }
 0x5cf   : > { %v3062_v11 = vadd.f32 %v2664_v10, %v2145_v48 }
 0x5d0   : > { %v2669_v7 = vmax.f32 %v3061_v61, 0.0 }
 0x5d1   : > { %v2670_v28 = vmax.f32 %v3062_v11, 0.0 }
 0x5d2   : > { %v3645_v30 = vsub.f32 %v2669_v7, %v2671_v4 }
 0x5d3   : > { %v3647_v35 = vsub.f32 %v2670_v28, %v2671_v4 }
 0x5d4   : > { %v2674_v3 = vand.u32 2147483647, %v3645_v30  ;;  %v2677_v19 = vand.u32 2139095040, %v3645_v30  ;;  %vm2676_vm9 = vcmp.lt.s32.totalorder %v3645_v30, 0 }
 0x5d5   : > { %v2780_v46 = vand.u32 2139095040, %v3647_v35  ;;  %v2777_v33 = vand.u32 2147483647, %v3647_v35 }
 0x5d6   : > { %v2678_v41 = vshrl.u32 %v2677_v19, 23  ;;  %v2681_v13 = vand.u32 8388607, %v2674_v3  ;;  %vm3700_vm10 = vcmp.le.f32.partialorder %v2674_v3, 0.7853982 }
 0x5d7   : > { %v2781_v1 = vshrl.u32 %v2780_v46, 23  ;;  %v3657_v57 = vand.u32 8388607, %v2777_v33 }
 0x5d8   : > { %v2948_v51 = vadd.s32 4294967169, %v2678_v41  ;;  %v2682_v9 = vor.u32 8388608, %v2681_v13 }
 0x5d9   : > { %v2952_v44 = vadd.s32 4294967169, %v2781_v1  ;;  %v2785_v56 = vor.u32 8388608, %v3657_v57 }
 0x5da   : > { %v2684_v58 = vadd.s32 1, %v2948_v51  ;;  %v3659_v34 = vshll.u32 %v2682_v9, 8 }
 0x5db   : > { %v2787_v18 = vadd.s32 1, %v2952_v44 }
 0x5dc   : > { %vm2685_vm11 = vcmp.gt.s32.totalorder %v2684_v58, 0 }
 0x5dd   : > { %v2686_v40 = vsel %vm2685_vm11, %v2684_v58, 0  ;;  %vm2788_vm12 = vcmp.gt.s32.totalorder %v2787_v18, 0  ;;  %vm2779_vm11 = vcmp.lt.s32.totalorder %v3647_v35, 0 }
 0x5de   : > { %v2687_v23 = vshrl.u32 %v2686_v40, 5  ;;  %v2688_v62 = vand.u32 31, %v2686_v40  ;;  %v2789_v12 = vsel %vm2788_vm12, %v2787_v18, 0  ;;  %vm3712_vm12 = vcmp.le.f32.partialorder %v2777_v33, 0.7853982 }
 0x5df   : > { %v3662_v49 = vshrl.u32 %v2789_v12, 5  ;;  %v2791_v20 = vand.u32 31, %v2789_v12 }
 0x5e0   : > { %v2689_v26 = vsub.s32 32, %v2688_v62  ;;  %v2691_v38 = vshll.u32 %v3177_v47, %v2688_v62  ;;  %v2694_v37 = vshll.u32 %v3178_v24, %v2688_v62  ;;  %v2697_v32 = vshll.u32 %v3179_v50, %v2688_v62 }
 0x5e1   : > { %v2700_v45 = vshll.u32 %v3180_v43, %v2688_v62  ;;  %v2703_v55 = vshll.u32 %v3181_v53, %v2688_v62  ;;  %vm2706_vm13 = vcmp.lt.s32.totalorder %v2687_v23, 1  ;;  %vm2707_vm14 = vcmp.lt.s32.totalorder %v2687_v23, 2 }
 0x5e2   : > { %v2692_v59 = vshrl.u32 %v3178_v24, %v2689_v26  ;;  %v2695_v60 = vshrl.u32 %v3179_v50, %v2689_v26  ;;  %v2698_v0 = vshrl.u32 %v3180_v43, %v2689_v26  ;;  %v2690_v2 = vshrl.u32 %v3177_v47, %v2689_v26 }
 0x5e3   : > { %v2701_v5 = vshrl.u32 %v3181_v53, %v2689_v26  ;;  %v2704_v8 = vshrl.u32 %v3182_v6, %v2689_v26  ;;  %v2792_v29 = vsub.s32 32, %v2791_v20  ;;  %vm2708_vm15 = vcmp.lt.s32.totalorder %v2687_v23, 3 }
 0x5e4   : > { %v2693_v14 = vor.u32 %v2692_v59, %v2691_v38  ;;  %v2696_v16 = vor.u32 %v2695_v60, %v2694_v37  ;;  %v2699_v17 = vor.u32 %v2698_v0, %v2697_v32  ;;  %vm2709_vm0 = vcmp.lt.s32.totalorder %v2687_v23, 4 }
 0x5e5   : > { %v2702_v36 = vor.u32 %v2701_v5, %v2700_v45  ;;  %v2705_v52 = vor.u32 %v2704_v8, %v2703_v55  ;;  %v2794_v48 = vshll.u32 %v3177_v47, %v2791_v20  ;;  %v2795_v4 = vshrl.u32 %v3178_v24, %v2792_v29 }
 0x5e6   : > { %v2710_v63 = vsel %vm2706_vm13, %v2690_v2, %v2693_v14  ;;  %v2711_v15 = vsel %vm2709_vm0, %v2699_v17, 2102212464  ;;  %v2714_v21 = vsel %vm2706_vm13, %v2693_v14, %v2696_v16  ;;  %v2718_v22 = vsel %vm2706_vm13, %v2696_v16, %v2699_v17 }
 0x5e7   : > { %v2712_v25 = vsel %vm2708_vm15, %v2696_v16, %v2711_v15  ;;  %v2715_v27 = vsel %vm2709_vm0, %v2702_v36, 920167782  ;;  %v2719_v31 = vsel %vm2709_vm0, %v2705_v52, 1326507024  ;;  %v2797_v10 = vshll.u32 %v3178_v24, %v2791_v20 }
 0x5e8   : > { %v2716_v54 = vsel %vm2708_vm15, %v2699_v17, %v2715_v27  ;;  %v2720_v61 = vsel %vm2708_vm15, %v2702_v36, %v2719_v31  ;;  %v2713_v11 = vsel %vm2707_vm14, %v2710_v63, %v2712_v25  ;;  %v2798_v19 = vshrl.u32 %v3179_v50, %v2792_v29 }
 0x5e9   : > { %v2717_v7 = vsel %vm2707_vm14, %v2714_v21, %v2716_v54  ;;  %v2721_v28 = vsel %vm2707_vm14, %v2718_v22, %v2720_v61  ;;  %v2796_v51 = vor.u32 %v2795_v4, %v2794_v48  ;;  %v2800_v58 = vshll.u32 %v3179_v50, %v2791_v20 }
 0x5ea   : > { %v3671_v46 = vmul.u32.u64.low %v3659_v34, %v2721_v28  ;;  %v3672_v41 = vmul.u32.u64.high %v3659_v34, %v2721_v28, %v3671_v46  ;;  %v3675_v13 = vmul.u32.u64.low %v3659_v34, %v2717_v7  ;;  %v3676_v1 = vmul.u32.u64.high %v3659_v34, %v2717_v7, %v3675_v13 }
 0x5eb   : > { %v2799_v44 = vor.u32 %v2798_v19, %v2797_v10  ;;  %v2801_v9 = vshrl.u32 %v3180_v43, %v2792_v29  ;;  %v2803_v57 = vshll.u32 %v3180_v43, %v2791_v20  ;;  %v2804_v18 = vshrl.u32 %v3181_v53, %v2792_v29 }
 0x5ec   : > { %v2807_v40 = vshrl.u32 %v3182_v6, %v2792_v29  ;;  %v2825_v62 = vshll.u32 %v2785_v56, 8  ;;  %v2729_v23 = vmul.u32 %v3659_v34, %v2713_v11  ;;  %v2793_v12 = vshrl.u32 %v3177_v47, %v2792_v29 }
 0x5ed   : > { %v2802_v26 = vor.u32 %v2801_v9, %v2800_v58  ;;  %v2806_v38 = vshll.u32 %v3181_v53, %v2791_v20  ;;  %vm2731_vm1 = vc.u32 %v3672_v41, %v3675_v13  ;;  %v2732_v24 = vadd.s32 1, %v3676_v1 }
 0x5ee   : > { %v2805_v37 = vor.u32 %v2804_v18, %v2803_v57  ;;  %vm2809_vm2 = vcmp.lt.s32.totalorder %v3662_v49, 1  ;;  %vm2811_vm3 = vcmp.lt.s32.totalorder %v3662_v49, 3  ;;  %vm2812_vm4 = vcmp.lt.s32.totalorder %v3662_v49, 4 }
 0x5ef   : > { %v2808_v32 = vor.u32 %v2807_v40, %v2806_v38  ;;  %v2817_v50 = vsel %vm2809_vm2, %v2796_v51, %v2799_v44  ;;  %v2733_v56 = vsel %vm2731_vm1, %v2732_v24, %v3676_v1  ;;  %v2814_v43 = vsel %vm2812_vm4, %v2802_v26, 2102212464 }
 0x5f0   : > { %v2818_v34 = vsel %vm2812_vm4, %v2805_v37, 920167782  ;;  %v2821_v47 = vsel %vm2809_vm2, %v2799_v44, %v2802_v26  ;;  %v2734_v45 = vadd.s32 %v2733_v56, %v2729_v23  ;;  %vm2810_vm5 = vcmp.lt.s32.totalorder %v3662_v49, 2 }
 0x5f1   : > { %v2819_v20 = vsel %vm2811_vm3, %v2802_v26, %v2818_v34  ;;  %v2822_v53 = vsel %vm2812_vm4, %v2808_v32, 1326507024  ;;  %v2813_v55 = vsel %vm2809_vm2, %v2793_v12, %v2796_v51  ;;  %v2815_v59 = vsel %vm2811_vm3, %v2799_v44, %v2814_v43 }
 0x5f2   : > { %v2820_v60 = vsel %vm2810_vm5, %v2817_v50, %v2819_v20  ;;  %v2823_v0 = vsel %vm2811_vm3, %v2805_v37, %v2822_v53  ;;  %v2735_v2 = vadd.s32 536870912, %v2734_v45  ;;  %v2816_v29 = vsel %vm2810_vm5, %v2813_v55, %v2815_v59 }
 0x5f3   : > { %v2824_v5 = vsel %vm2810_vm5, %v2821_v47, %v2823_v0  ;;  %v3686_v6 = vmul.u32.u64.low %v2825_v62, %v2820_v60  ;;  %v3687_v8 = vmul.u32.u64.high %v2825_v62, %v2820_v60, %v3686_v6  ;;  %v2832_v49 = vmul.u32 %v2825_v62, %v2816_v29  ;;  %v2140_v29 = vpop.permute.xlu0 %2139 }
 0x5f4   : > { %v3689_v14 = vmul.u32.u64.low %v2825_v62, %v2824_v5  ;;  %v3690_v16 = vmul.u32.u64.high %v2825_v62, %v2824_v5, %v3689_v14  ;;  %v2736_v17 = vshrl.u32 %v2735_v2, 30  ;;  %v2730_v7 = vadd.s32 %v3675_v13, %v3672_v41 }
 0x5f5   : > { %v2835_v52 = vadd.s32 1, %v3687_v8  ;;  %vm2766_vm0 = vweird.f32 %v3645_v30  ;;  %vm2869_vm4 = vweird.f32 %v3647_v35 }
 0x5f6   : > { %v2737_v36 = vshll.u32 %v2736_v17, 30  ;;  %vm2834_vm6 = vc.u32 %v3690_v16, %v3686_v6  ;;  %v2833_v26 = vadd.s32 %v3686_v6, %v3690_v16 }
 0x5f7   : > { %v2836_v15 = vsel %vm2834_vm6, %v2835_v52, %v3687_v8  ;;  %v3059_v52 = vadd.f32 %v3640_v39, %v2140_v29 }
 0x5f8   : > { %v2738_v63 = vsub.s32 %v2734_v45, %v2737_v36  ;;  %v2837_v21 = vadd.s32 %v2836_v15, %v2832_v49  ;;  %v2760_v45 = vsub.s32 4, %v2736_v17 }
 0x5fa   : > { %v2740_v22 = vsub.s32 0, %v2738_v63  ;;  %v2838_v25 = vadd.s32 536870912, %v2837_v21  ;;  %v2761_v60 = vsel %vm2676_vm9, %v2760_v45, %v2736_v17 }
 0x5fb   : > { %v2763_v2 = vsel %vm3700_vm10, 0, %v2761_v60 }
 0x5fc   : > { %v2949_v27 = vmin.u32 %v2740_v22, %v2738_v63  ;;  %v2839_v31 = vshrl.u32 %v2838_v25, 30  ;;  %v2767_v14 = vand.u32 3, %v2763_v2  ;;  %v2667_v25 = vmax.f32 %v3059_v52, 0.0 }
 0x5fe   : > { %v2742_v48 = vclz %v2949_v27  ;;  %v2840_v54 = vshll.u32 %v2839_v31, 30  ;;  %v2863_v8 = vsub.s32 4, %v2839_v31  ;;  %vm2772_vm13 = vcmp.eq.s32.totalorder %v2767_v14, 2 }
 0x5ff   : > { %vm2769_vm14 = vcmp.eq.s32.totalorder %v2767_v14, 0  ;;  %vm2768_vm15 = vcmp.lt.s32.totalorder %v2767_v14, 2 }
 0x600   : > { %v2950_v61 = vadd.s32 4294967294, %v2742_v48  ;;  %v2841_v4 = vsub.s32 %v2837_v21, %v2840_v54 }
 0x602   : > { %vm2951_vm7 = vcmp.lt.s32.totalorder %v2950_v61, 0  ;;  %v2843_v11 = vsub.s32 0, %v2841_v4 }
 0x603   : > { %v2745_v10 = vsel %vm2951_vm7, 0, %v2950_v61 }
 0x604   : > { %v2746_v28 = vsub.s32 32, %v2745_v10  ;;  %v2750_v19 = vsub.s32 4294967266, %v2745_v10  ;;  %v2953_v46 = vmin.u32 %v2843_v11, %v2841_v4  ;;  %v2747_v1 = vshll.u32 %v2738_v63, %v2745_v10 }
 0x605   : > { %v2864_v63 = vsel %vm2779_vm11, %v2863_v8, %v2839_v31 }
 0x606   : > { %v2748_v51 = vshrl.u32 %v2730_v7, %v2746_v28  ;;  %v2751_v44 = vadd.s32 127, %v2750_v19  ;;  %v2845_v58 = vclz %v2953_v46  ;;  %v2866_v22 = vsel %vm3712_vm12, 0, %v2864_v63 }
 0x607   : > { %v2870_v48 = vand.u32 3, %v2866_v22 }
 0x608   : > { %v2749_v9 = vor.u32 %v2748_v51, %v2747_v1  ;;  %v2752_v57 = vshll.u32 %v2751_v44, 23  ;;  %v2954_v18 = vadd.s32 4294967294, %v2845_v58 }
 0x609   : > { %vm2875_vm1 = vcmp.eq.s32.totalorder %v2870_v48, 2  ;;  %vm2872_vm2 = vcmp.eq.s32.totalorder %v2870_v48, 0  ;;  %vm2871_vm3 = vcmp.lt.s32.totalorder %v2870_v48, 2 }
 0x60a   : > { %v2753_v40 = vor.u32 4788187, %v2752_v57  ;;  %vm2955_vm8 = vcmp.lt.s32.totalorder %v2954_v18, 0  ;;  %v2756_v23 = vcvt.s32.f32 %v2749_v9 }
 0x60b   : > { %v2848_v12 = vsel %vm2955_vm8, 0, %v2954_v18 }
 0x60c   : > { %v2754_v62 = vand.u32 2147483647, %v2753_v40  ;;  %v2849_v38 = vsub.s32 32, %v2848_v12  ;;  %v2853_v24 = vsub.s32 4294967266, %v2848_v12  ;;  %v2850_v13 = vshll.u32 %v2841_v4, %v2848_v12 }
 0x60d   : > { %v3060_v4 = vadd.f32 %v3642_v42, %v2140_v29 }
 0x60e   : > { %v2757_v41 = vmul.f32 %v2756_v23, %v2754_v62  ;;  %v2851_v37 = vshrl.u32 %v2833_v26, %v2849_v38  ;;  %v2854_v32 = vadd.s32 127, %v2853_v24 }
 0x60f   : > { %v2668_v28 = vmax.f32 %v3060_v4, 0.0 }
 0x610   : > { %v2758_v50 = vxor.u32 2147483648, %v2757_v41  ;;  %v2852_v56 = vor.u32 %v2851_v37, %v2850_v13  ;;  %v2855_v43 = vshll.u32 %v2854_v32, 23 }
 0x612   : > { %v2759_v47 = vsel %vm2676_vm9, %v2758_v50, %v2757_v41  ;;  %v2856_v53 = vor.u32 4788187, %v2855_v43  ;;  %v2859_v59 = vcvt.s32.f32 %v2852_v56 }
 0x613   : > { %v2762_v20 = vsel %vm3700_vm10, %v3645_v30, %v2759_v47 }
 0x614   : > { %3151 = vcosq.f32 %v2762_v20  ;;  %v2857_v55 = vand.u32 2147483647, %v2856_v53 }
 0x615   : > { %3153 = vsinq.f32 %v2762_v20 }
 0x616   : > { %v2860_v0 = vmul.f32 %v2859_v59, %v2857_v55 }
 0x618   : > { %v2861_v3 = vxor.u32 2147483648, %v2860_v0 }
 0x61a   : > { %v2862_v6 = vsel %vm2779_vm11, %v2861_v3, %v2860_v0 }
 0x61b   : > { %v2865_v16 = vsel %vm3712_vm12, %v3647_v35, %v2862_v6 }
 0x61c   : > { %3155 = vcosq.f32 %v2865_v16 }
 0x61d   : > { %3157 = vsinq.f32 %v2865_v16 }
 0x61e   : > { %v3152_v17 = vpop.eup %3151 }
 0x61f   : > { %v3154_v36 = vpop.eup %3153  ;;  %v2773_v49 = vxor.u32 2147483648, %v3152_v17 }
 0x620   : > { %v2770_v33 = vxor.u32 2147483648, %v3154_v36 }
 0x621   : > { %v2774_v15 = vsel %vm2772_vm13, %v2773_v49, %v3154_v36 }
 0x622   : > { %v2771_v21 = vsel %vm2769_vm14, %v3152_v17, %v2770_v33 }
 0x623   : > { %v2775_v27 = vsel %vm2768_vm15, %v2771_v21, %v2774_v15 }
 0x624   : > { %v2776_v39 = vsel %vm2766_vm0, nan, %v2775_v27 }
 0x625   : > { %v2880_v31 = vmul.f32 %v2776_v39, %v2667_v25 }
 0x626   : > { %v3156_v54 = vpop.eup %3155 }
 0x627   : > { %2882 = vst [vmem:[%s332_s27] sm:$0xff] %v2880_v31  ;;  %v3158_v61 = vpop.eup %3157  ;;  %v2876_v10 = vxor.u32 2147483648, %v3156_v54 }
 0x628   : > { %v2873_v11 = vxor.u32 2147483648, %v3158_v61 }
 0x629   : > { %v2877_v7 = vsel %vm2875_vm1, %v2876_v10, %v3158_v61 }
 0x62a   : > { %v2874_v30 = vsel %vm2872_vm2, %v3156_v54, %v2873_v11 }
 0x62b   : > { %v2878_v19 = vsel %vm2871_vm3, %v2874_v30, %v2877_v7 }
 0x62c   : > { %v2879_v46 = vsel %vm2869_vm4, nan, %v2878_v19 }
 0x62d   : > { %v2881_v1 = vmul.f32 %v2879_v46, %v2668_v28 }
 0x62f   : > { %2883 = vst [vmem:[%s332_s27 + $0x8] sm:$0xff] %v2881_v1 }
 0x630 PF: > { %s19_s30 = sadd.s32 1, %s3165_s30  }
 0x631   : > { %p16_p4 = scmp.ge.s32.totalorder %s19_s30, 4  }
 0x633   :  { %18 = sbr.rel (!%p16_p4) target bundleno = 1 (0x1), region = 86 }

// kernel: apmg_forward.3
= control target key start
LH: loop header
LB: loop body
LE: loop exit
PB: predicated region body
PF: predicated region fallthrough
CT: control target
= control target key end

     0   :  { %s2124_s15 = smov 0   ;;  %s2752_s0 = inlined_call_operand.vmem [shape: f32[2,8,512], index: 0, kind: input, shape index: {}]   ;;  %s2753_s1 = inlined_call_operand.vmem [shape: f32[2,4,384], index: 1, kind: input, shape index: {}]   ;;  %s2754_s2 = inlined_call_operand.vmem [shape: f32[4,72], index: 2, kind: input, shape index: {}]   ;;  %s2755_s3 = inlined_call_operand.vmem [shape: f32[4,1], index: 3, kind: input, shape index: {}]   ;;  %s2756_s4 = inlined_call_operand.vmem [shape: f32[2,4,384], index: 4, kind: output, shape index: {}]  }
   0x1 LB: > { %s1667_s16 = sadd.s32 4294967295, %s2085_s15   ;;  %p1671_p0 = scmp.ge.s32.totalorder %s2085_s15, 1  ;;  %s2085_s15 = sphi %s2124_s15, %s14_s15  }
   0x2   : > { %p172_p1 = scmp.lt.s32.totalorder %s2085_s15, 3 }
   0x4   : > { %p173_p2 = pnand %p1671_p0, %p172_p1 }
   0x6   : > { %176 = sbr.rel (%p173_p2) target bundleno = 515 (0x203), region = 36 }
   0xd   : > { %p203_p3 = scmp.lt.s32.totalorder %s1667_s16, 1  ;;  %v2763_v0 = vmov 0.0|0.0   ;;  %s2088_s21 = smov 127   ;;  %v2765_v5 = vmov 0.0   ;;  %vm2096_vm0 = vmmov 0   ;;  %vm237_vm1 = vcmask 1039360  }
   0xe   : > { %1961 = vmatprep.subr.bf16.mxu1 %v2763_v0  ;;  %s2089_s22 = smov 126   ;;  %s2090_s23 = smov 110   ;;  %442 = vmatprep.mubr.f32.mxu0 %v2765_v5  ;;  %vm252_vm2 = vcmask 1031168   ;;  %vm267_vm3 = vcmask 900096   ;;  %vm282_vm4 = vcmask 891904   ;;  %vm297_vm5 = vcmask 883712  }
   0xf   : > { %s2856_s16 = smov (!%p203_p3, %s1667_s16), 1  ;;  %s2091_s24 = smov 109   ;;  %1757 = vmatprep.mubr.msk.f32.mxu1 %vm2096_vm0, %v2765_v5  ;;  %v349_v50 = vld [vmem:[%s2754_s2] sm:$0xf]  ;;  %vm356_vm6 = vcmask 588800   ;;  %vm312_vm7 = vcmask 752640  }
  0x10   : > { %s1678_s17 = sshll.u32 %s2856_s16, 5  ;;  %s2092_s25 = smov 108   ;;  %v358_v54 = vsel %vm356_vm6, %v349_v50, 0  ;;  %v350_v59 = vld [vmem:[%s2755_s3] sm:$0xf]  ;;  %vm327_vm8 = vcmask 744448  }
  0x11   : > { %s207_s20 = scalar_lea.vmem %s2752_s0, %s1678_s17  ;;  %s2093_s26 = smov 92   ;;  %vm342_vm9 = vcmask 736256  }
  0x12   : > { %v2139_v1 = vld [vmem:[%s207_s20 + $0x8] sm:$0xff]  ;;  %v2141_v2 = vld [vmem:[%s207_s20] sm:$0xff]  ;;  %v2145_v3 = vld [vmem:[%s207_s20 + $0x10] sm:$0xff]  ;;  %s2094_s27 = smov 91   ;;  %s2097_s28 = smov 90  }
  0x13   : > { %231 = vrot.lane.b32.xlu0 %v2139_v1, %s2088_s21  ;;  %229 = vrot.lane.b32.xlu1 %v2141_v2, %s2088_s21  ;;  %v224_v4 = vld [vmem:[%s207_s20 + $0x18] sm:$0xff]  ;;  %v360_v11 = vand.u32 4294901760, %v2139_v1  ;;  %v1034_v12 = vand.u32 4294901760, %v2145_v3  ;;  %v362_v16 = vand.u32 4294901760, %v2141_v2  ;;  %s2056_s7 = smul.u32 12, %s2856_s16 }
  0x15   : > { %v2258_v55 = vsub.f32 %v2139_v1, %v360_v11  ;;  %v2270_v60 = vsub.f32 %v2145_v3, %v1034_v12  ;;  %v2273_v61 = vsub.f32 %v2141_v2, %v362_v16  ;;  %s212_s10 = scalar_lea.vmem %s2753_s1, %s2056_s7  ;;  %s217_s13 = scalar_lea.vmem %s2756_s4, %s2056_s7 }
  0x17   : > { %233 = vrot.lane.b32.xlu0 %v2145_v3, %s2088_s21  ;;  %235 = vrot.lane.b32.xlu1 %v224_v4, %s2088_s21 }
  0x1b   : > { %246 = vrot.lane.b32.xlu0 %v2139_v1, %s2089_s22  ;;  %248 = vrot.lane.b32.xlu1 %v2145_v3, %s2089_s22 }
  0x1f   : > { %261 = vrot.lane.b32.xlu0 %v2139_v1, %s2090_s23  ;;  %263 = vrot.lane.b32.xlu1 %v2145_v3, %s2090_s23 }
  0x23   : > { %244 = vrot.lane.b32.xlu0 %v2141_v2, %s2089_s22  ;;  %259 = vrot.lane.b32.xlu1 %v2141_v2, %s2090_s23 }
  0x27   : > { %250 = vrot.lane.b32.xlu0 %v224_v4, %s2089_s22  ;;  %265 = vrot.lane.b32.xlu1 %v224_v4, %s2090_s23 }
  0x2b   : > { %276 = vrot.lane.b32.xlu0 %v2139_v1, %s2091_s24  ;;  %278 = vrot.lane.b32.xlu1 %v2145_v3, %s2091_s24 }
  0x2f   : > { %291 = vrot.lane.b32.xlu0 %v2139_v1, %s2092_s25  ;;  %293 = vrot.lane.b32.xlu1 %v2145_v3, %s2092_s25 }
  0x33   : > { %274 = vrot.lane.b32.xlu0 %v2141_v2, %s2091_s24  ;;  %289 = vrot.lane.b32.xlu1 %v2141_v2, %s2092_s25 }
  0x37   : > { %280 = vrot.lane.b32.xlu0 %v224_v4, %s2091_s24  ;;  %295 = vrot.lane.b32.xlu1 %v224_v4, %s2092_s25 }
  0x3b   : > { %306 = vrot.lane.b32.xlu0 %v2139_v1, %s2093_s26  ;;  %308 = vrot.lane.b32.xlu1 %v2145_v3, %s2093_s26 }
  0x3f   : > { %321 = vrot.lane.b32.xlu0 %v2139_v1, %s2094_s27  ;;  %323 = vrot.lane.b32.xlu1 %v2145_v3, %s2094_s27 }
  0x43   : > { %304 = vrot.lane.b32.xlu0 %v2141_v2, %s2093_s26  ;;  %319 = vrot.lane.b32.xlu1 %v2141_v2, %s2094_s27 }
  0x47   : > { %310 = vrot.lane.b32.xlu0 %v224_v4, %s2093_s26  ;;  %325 = vrot.lane.b32.xlu1 %v224_v4, %s2094_s27 }
  0x4b   : > { %336 = vrot.lane.b32.xlu0 %v2139_v1, %s2097_s28  ;;  %338 = vrot.lane.b32.xlu1 %v2145_v3, %s2097_s28  ;;  %v2098_v1 = vmov 0  }
  0x4c   : > { %2077 = vset.pattern.permute.xlu0 %v2098_v1 }
  0x4f   : > { %334 = vrot.lane.b32.xlu0 %v2141_v2, %s2097_s28  ;;  %340 = vrot.lane.b32.xlu1 %v224_v4, %s2097_s28 }
  0x53   : > { %353 = vperm.xlu0 %2077, %v350_v59  }
  0x85   : > { %v232_v6 = vpop.permute.xlu0 %231  ;;  %v230_v7 = vpop.permute.xlu1 %229 }
  0x86   : > { %v2172_v8 = vsel %vm237_vm1, %v230_v7, %v232_v6  ;;  %v2284_v7 = vand.u32 4294901760, %v358_v54 }
  0x87   : > { %v366_v13 = vand.u32 4294901760, %v2172_v8 }
  0x89   : > { %v234_v9 = vpop.permute.xlu0 %233  ;;  %v236_v10 = vpop.permute.xlu1 %235  ;;  %v2194_v23 = vpack.c.bf16 %v366_v13, %v362_v16  ;;  %v2289_v2 = vsub.f32 %v2172_v8, %v366_v13  ;;  %v2762_v8 = vand.u32 4294901760, %v2258_v55  ;;  %v2760_v16 = vand.u32 4294901760, %v2273_v61 }
  0x8a   : > { %v2177_v14 = vsel %vm237_vm1, %v232_v6, %v234_v9  ;;  %v2179_v15 = vsel %vm237_vm1, %v234_v9, %v236_v10 }
  0x8b   : > { %v364_v17 = vand.u32 4294901760, %v2177_v14  ;;  %v1037_v18 = vand.u32 4294901760, %v2179_v15 }
  0x8d   : > { %v247_v19 = vpop.permute.xlu0 %246  ;;  %v249_v20 = vpop.permute.xlu1 %248  ;;  %v2186_v21 = vpack.c.bf16 %v364_v17, %v360_v11  ;;  %v2190_v22 = vpack.c.bf16 %v1037_v18, %v1034_v12  ;;  %v2294_v3 = vsub.f32 %v2177_v14, %v364_v17  ;;  %v2299_v9 = vsub.f32 %v2179_v15, %v1037_v18 }
  0x8e   : > { %v2198_v24 = vsel %vm252_vm2, %v247_v19, %v249_v20  ;;  %v2758_v15 = vand.u32 4294901760, %v2270_v60  ;;  %v2319_v18 = vsub.f32 %v358_v54, %v2284_v7 }
  0x8f   : > { %1866 = vmatprep.subr.bf16.mxu0 %v2186_v21  ;;  %1963 = vmatpush3.bf16.msra.mxu1 %v2190_v22  ;;  %v368_v28 = vand.u32 4294901760, %v2198_v24 }
  0x90   : > { %1868 = vmatpush1.bf16.msra.mxu0 %v2194_v23  ;;  %1964 = vmatprep.subr.bf16.mxu1 %v2763_v0 }
  0x91   : > { %v262_v25 = vpop.permute.xlu0 %261  ;;  %v264_v26 = vpop.permute.xlu1 %263 }
  0x92   : > { %v2204_v27 = vsel %vm267_vm3, %v262_v25, %v264_v26 }
  0x93   : > { %v372_v29 = vand.u32 4294901760, %v2204_v27 }
  0x95   : > { %v245_v30 = vpop.permute.xlu0 %244  ;;  %v260_v31 = vpop.permute.xlu1 %259  ;;  %v2212_v32 = vpack.c.bf16 %v372_v29, %v368_v28 }
  0x96   : > { %v2215_v33 = vsel %vm252_vm2, %v245_v30, %v247_v19  ;;  %v2218_v34 = vsel %vm267_vm3, %v260_v31, %v262_v25  ;;  %v2759_v19 = vand.u32 4294901760, %v2289_v2  ;;  %v2757_v25 = vand.u32 4294901760, %v2299_v9 }
  0x97   : > { %v370_v35 = vand.u32 4294901760, %v2215_v33  ;;  %v374_v36 = vand.u32 4294901760, %v2218_v34  ;;  %1870 = vmatprep.subr.bf16.mxu0 %v2212_v32 }
  0x98   : > { %v475_v50 = vsub.f32 %v2289_v2, %v2759_v19  ;;  %v1128_v54 = vsub.f32 %v2299_v9, %v2757_v25 }
  0x99   : > { %v251_v37 = vpop.permute.xlu0 %250  ;;  %v266_v38 = vpop.permute.xlu1 %265  ;;  %v2227_v39 = vpack.c.bf16 %v374_v36, %v370_v35  ;;  %v2374_v59 = vsub.f32 %v2218_v34, %v374_v36 }
  0x9a   : > { %v2230_v40 = vsel %vm252_vm2, %v249_v20, %v251_v37  ;;  %v2233_v41 = vsel %vm267_vm3, %v264_v26, %v266_v38  ;;  %v2761_v20 = vand.u32 4294901760, %v2294_v3  ;;  %v457_v37 = vsub.f32 %v2258_v55, %v2762_v8 }
  0x9b   : > { %2796 = vst [vmem:[#allocation2_spill] sm:$0xff] %v2227_v39  ;;  %v1040_v42 = vand.u32 4294901760, %v2230_v40  ;;  %1872 = vmatpush1.bf16.msra.mxu0 %v2227_v39  ;;  %v1043_v43 = vand.u32 4294901760, %v2233_v41  ;;  %v1129_v19 = vand.u32 4294901760, %v1128_v54 }
  0x9d   : > { %v277_v44 = vpop.permute.xlu0 %276  ;;  %v279_v45 = vpop.permute.xlu1 %278  ;;  %v2242_v46 = vpack.c.bf16 %v1043_v43, %v1040_v42  ;;  %v2387_v34 = vsub.f32 %v2233_v41, %v1043_v43 }
  0x9e   : > { %v2245_v47 = vsel %vm282_vm4, %v277_v44, %v279_v45 }
  0x9f   : > { %2797 = vst [vmem:[#allocation3_spill] sm:$0xff] %v2242_v46  ;;  %1966 = vmatpush3.bf16.msra.mxu1 %v2242_v46  ;;  %v376_v52 = vand.u32 4294901760, %v2245_v47  ;;  %v2775_v54 = vand.u32 4294901760, %v2387_v34 }
  0xa0   : > { %1967 = vmatprep.subr.bf16.mxu1 %v2763_v0 }
  0xa1   : > { %v292_v48 = vpop.permute.xlu0 %291  ;;  %v294_v49 = vpop.permute.xlu1 %293 }
  0xa2   : > { %v2253_v51 = vsel %vm297_vm5, %v292_v48, %v294_v49 }
  0xa3   : > { %v380_v53 = vand.u32 4294901760, %v2253_v51 }
  0xa5   : > { %v275_v56 = vpop.permute.xlu0 %274  ;;  %v290_v57 = vpop.permute.xlu1 %289  ;;  %v2264_v58 = vpack.c.bf16 %v380_v53, %v376_v52 }
  0xa6   : > { %v2276_v62 = vsel %vm282_vm4, %v275_v56, %v277_v44  ;;  %v2279_v63 = vsel %vm297_vm5, %v290_v57, %v292_v48  ;;  %v463_v44 = vsub.f32 %v2273_v61, %v2760_v16  ;;  %v2343_v48 = vsub.f32 %v2198_v24, %v368_v28 }
  0xa7   : > { %2798 = vst [vmem:[#allocation4_spill] sm:$0xff] %v2264_v58  ;;  %v2770_v4 = vand.u32 4294901760, %v2276_v62  ;;  %v2769_v6 = vand.u32 4294901760, %v2279_v63  ;;  %1874 = vmatprep.subr.bf16.mxu0 %v2264_v58  ;;  %v469_v24 = vsub.f32 %v2294_v3, %v2761_v20  ;;  %v2364_v28 = vsub.f32 %v2204_v27, %v372_v29 }
  0xa8   : > { %v2369_v57 = vsub.f32 %v2215_v33, %v370_v35  ;;  %v2380_v27 = vsub.f32 %v2230_v40, %v1040_v42  ;;  %v464_v25 = vand.u32 4294901760, %v463_v44  ;;  %v2771_v35 = vand.u32 4294901760, %v2343_v48 }
  0xa9   : > { %v281_v10 = vpop.permute.xlu0 %280  ;;  %v296_v11 = vpop.permute.xlu1 %295  ;;  %v2305_v12 = vpack.c.bf16 %v2769_v6, %v2770_v4  ;;  %v470_v16 = vand.u32 4294901760, %v469_v24  ;;  %v2776_v42 = vand.u32 4294901760, %v2364_v28 }
  0xaa   : > { %v2309_v13 = vsel %vm282_vm4, %v279_v45, %v281_v10  ;;  %v2312_v14 = vsel %vm297_vm5, %v294_v49, %v296_v11  ;;  %v1121_v45 = vsub.f32 %v2270_v60, %v2758_v15  ;;  %v2346_v49 = vand.u32 4294901760, %v2319_v18 }
  0xab   : > { %2799 = vst [vmem:[#allocation5_spill] sm:$0xff] %v2305_v12  ;;  %v2768_v17 = vand.u32 4294901760, %v2309_v13  ;;  %1876 = vmatpush1.bf16.msra.mxu0 %v2305_v12  ;;  %v2767_v26 = vand.u32 4294901760, %v2312_v14  ;;  %v458_v11 = vand.u32 4294901760, %v457_v37  ;;  %v476_v37 = vand.u32 4294901760, %v475_v50 }
  0xac   : > { %2801 = vst [vmem:[#allocation7_spill] sm:$0xff] %v2346_v49  ;;  %v1122_v33 = vand.u32 4294901760, %v1121_v45  ;;  %v446_v40 = vsub.f32 %v2319_v18, %v2346_v49  ;;  %v2774_v44 = vand.u32 4294901760, %v2369_v57  ;;  %v2772_v45 = vand.u32 4294901760, %v2374_v59 }
  0xad   : > { %v307_v30 = vpop.permute.xlu0 %306  ;;  %v309_v31 = vpop.permute.xlu1 %308  ;;  %v2332_v38 = vpack.c.bf16 %v2767_v26, %v2768_v17  ;;  %v2773_v41 = vand.u32 4294901760, %v2380_v27  ;;  %v2405_v26 = vsub.f32 %v2343_v48, %v2771_v35  ;;  %v2407_v17 = vpack.c.bf16 %v470_v16, %v458_v11 }
  0xae   : > { %v2355_v56 = vsel %vm312_vm7, %v307_v30, %v309_v31  ;;  %v2409_v6 = vand.u32 4294901760, %v446_v40  ;;  %v2411_v4 = vpack.c.bf16 %v476_v37, %v464_v25  ;;  %v2430_v25 = vsub.f32 %v2364_v28, %v2776_v42 }
  0xaf   : > { %2800 = vst [vmem:[#allocation6_spill] sm:$0xff] %v2332_v38  ;;  %1969 = vmatpush3.bf16.msra.mxu1 %v2332_v38  ;;  %v384_v36 = vand.u32 4294901760, %v2355_v56  ;;  %v2440_v11 = vsub.f32 %v2245_v47, %v376_v52  ;;  %v1142_v40 = vsub.f32 %v2387_v34, %v2775_v54  ;;  %v2804_v47 = vand.u32 4294901760, %v2276_v62 }
  0xb0   : > { %1970 = vmatprep.subr.bf16.mxu1 %v2763_v0  ;;  %v2807_v54 = vand.u32 4294901760, %v2312_v14 }
  0xb1   : > { %v322_v1 = vpop.permute.xlu0 %321  ;;  %v324_v10 = vpop.permute.xlu1 %323  ;;  %v2457_v52 = vsub.f32 %v2276_v62, %v2804_v47  ;;  %v2810_v49 = vand.u32 4294901760, %v2440_v11 }
  0xb2   : > { %v329_v29 = vsel %vm327_vm8, %v322_v1, %v324_v10  ;;  %v2474_v62 = vsub.f32 %v2312_v14, %v2807_v54  ;;  %v2809_v54 = vmov 0.0  }
  0xb3   : > { %v388_v15 = vand.u32 4294901760, %v329_v29  ;;  %v2787_v14 = vand.u32 4294901760, %v2457_v52 }
  0xb5   : > { %v305_v20 = vpop.permute.xlu0 %304  ;;  %v320_v8 = vpop.permute.xlu1 %319  ;;  %v2395_v0 = vpack.c.bf16 %v388_v15, %v384_v36 }
  0xb6   : > { %v313_v43 = vsel %vm312_vm7, %v305_v20, %v307_v30  ;;  %v328_v50 = vsel %vm327_vm8, %v320_v8, %v322_v1  ;;  %v2413_v20 = vpack.c.bf16 %v1129_v19, %v1122_v33  ;;  %v2418_v8 = vsub.f32 %v2369_v57, %v2774_v44 }
  0xb7   : > { %2802 = vst [vmem:[#allocation8_spill] sm:$0xff] %v2395_v0  ;;  %v386_v24 = vand.u32 4294901760, %v313_v43  ;;  %v390_v5 = vand.u32 4294901760, %v328_v50  ;;  %1878 = vmatprep.subr.bf16.mxu0 %v2395_v0  ;;  %v2423_v30 = vsub.f32 %v2374_v59, %v2772_v45  ;;  %v2435_v19 = vsub.f32 %v2380_v27, %v2773_v41 }
  0xb8   : > { %v2450_v45 = vsub.f32 %v2253_v51, %v380_v53  ;;  %v482_v44 = vand.u32 4294901760, %v2405_v26 }
  0xb9   : > { %v311_v1 = vpop.permute.xlu0 %310  ;;  %v326_v35 = vpop.permute.xlu1 %325  ;;  %v2425_v16 = vpack.c.bf16 %v390_v5, %v386_v24  ;;  %v500_v26 = vand.u32 4294901760, %v2423_v30  ;;  %v2497_v30 = vsub.f32 %v328_v50, %v390_v5 }
  0xba   : > { %v315_v33 = vsel %vm312_vm7, %v309_v31, %v311_v1  ;;  %v330_v37 = vsel %vm327_vm8, %v324_v10, %v326_v35  ;;  %v2805_v31 = vand.u32 4294901760, %v2279_v63  ;;  %v2806_v35 = vand.u32 4294901760, %v2309_v13 }
  0xbb   : > { %2803 = vst [vmem:[#allocation9_spill] sm:$0xff] %v2425_v16  ;;  %v1052_v41 = vand.u32 4294901760, %v315_v33  ;;  %1880 = vmatpush1.bf16.msra.mxu0 %v2425_v16  ;;  %v1055_v53 = vand.u32 4294901760, %v330_v37  ;;  %v488_v1 = vand.u32 4294901760, %v2418_v8  ;;  %v1143_v8 = vand.u32 4294901760, %v1142_v40 }
  0xbc   : > { %v2462_v10 = vsub.f32 %v2279_v63, %v2805_v31  ;;  %v2467_v51 = vsub.f32 %v2309_v13, %v2806_v35  ;;  %v494_v63 = vand.u32 4294901760, %v2430_v25  ;;  %v1136_v31 = vand.u32 4294901760, %v2435_v19 }
  0xbd   : > { %v337_v47 = vpop.permute.xlu0 %336  ;;  %v339_v42 = vpop.permute.xlu1 %338  ;;  %v2480_v35 = vpack.c.bf16 %v1055_v53, %v1052_v41  ;;  %v2483_v16 = vsub.f32 %v329_v29, %v388_v15  ;;  %v2491_v19 = vsub.f32 %v2355_v56, %v384_v36  ;;  %v2495_v40 = vsub.f32 %v313_v43, %v386_v24 }
  0xbe   : > { %v344_v13 = vsel %vm342_vm9, %v337_v47, %v339_v42  ;;  %v2499_v15 = vsub.f32 %v315_v33, %v1052_v41  ;;  %v2503_v25 = vsub.f32 %v330_v37, %v1055_v53  ;;  %v505_v43 = vsub.f32 %v2440_v11, %v2810_v49 }
  0xbf   : > { %2808 = vst [vmem:[#allocation10_spill] sm:$0xff] %v2480_v35  ;;  %v2485_v0 = vand.u32 4294901760, %v344_v13  ;;  %1972 = vmatpush3.bf16.msra.mxu1 %v2480_v35  ;;  %v2811_v24 = vand.u32 4294901760, %v2450_v45  ;;  %v511_v37 = vsub.f32 %v2457_v52, %v2787_v14  ;;  %v2813_v49 = vand.u32 4294901760, %v2467_v51 }
  0xc0   : > { %1755 = vmatprep.subr.mxu1 %v2809_v54  ;;  %v1887_v12 = vpack.c.bf16 %v500_v26, %v488_v1  ;;  %v1977_v58 = vpack.c.bf16 %v1143_v8, %v1136_v31  ;;  %v506_v14 = vand.u32 4294901760, %v505_v43  ;;  %v2819_v31 = vand.u32 4294901760, %v2497_v30 }
  0xc1   : > { %v335_v29 = vpop.permute.xlu0 %334  ;;  %v341_v38 = vpop.permute.xlu1 %340  ;;  %393 = vmatprep.subr.mxu0 %v2485_v0  ;;  %v517_v33 = vsub.f32 %v2450_v45, %v2811_v24  ;;  %v1149_v53 = vsub.f32 %v2467_v51, %v2813_v49  ;;  %v2815_v49 = vmov 0.0|0.0   ;;  %v2816_v24 = vand.u32 4294901760, %v2483_v16 }
  0xc2   : > { %v343_v56 = vsel %vm342_vm9, %v335_v29, %v337_v47  ;;  %v345_v36 = vsel %vm342_vm9, %v339_v42, %v341_v38  ;;  %v2812_v38 = vand.u32 4294901760, %v2462_v10  ;;  %v2814_v29 = vand.u32 4294901760, %v2474_v62 }
  0xc3   : > { %v2511_v41 = vand.u32 4294901760, %v343_v56  ;;  %v2513_v50 = vand.u32 4294901760, %v345_v36  ;;  %v1885_v47 = vpack.c.bf16 %v494_v63, %v482_v44  ;;  %v518_v35 = vand.u32 4294901760, %v517_v33 }
  0xc4   : > { %v523_v42 = vsub.f32 %v2462_v10, %v2812_v38  ;;  %v1156_v5 = vsub.f32 %v2474_v62, %v2814_v29  ;;  %v2540_v29 = vsub.f32 %v344_v13, %v2485_v0  ;;  %v541_v38 = vsub.f32 %v2483_v16, %v2816_v24 }
  0xc5   : > { %395 = vmatpush1.msra.mxu0 %v2511_v41  ;;  %1756 = vmatpush3.msra.mxu1 %v2513_v50  ;;  %v512_v46 = vand.u32 4294901760, %v511_v37  ;;  %v1150_v39 = vand.u32 4294901760, %v1149_v53  ;;  %v2817_v44 = vand.u32 4294901760, %v2491_v19  ;;  %v547_v13 = vsub.f32 %v2497_v30, %v2819_v31 }
  0xc6   : > { %1882 = vmatprep.subr.bf16.mxu0 %v2407_v17  ;;  %1973 = vmatprep.subr.bf16.mxu1 %v2815_v49  ;;  %v524_v17 = vand.u32 4294901760, %v523_v42  ;;  %v1157_v26 = vand.u32 4294901760, %v1156_v5  ;;  %v2820_v8 = vand.u32 4294901760, %v2499_v15  ;;  %v2566_v5 = vsub.f32 %v343_v56, %v2511_v41 }
  0xc7   : > { %448 = vmatmul.mubr.f32.vlgmr.msra.gmra.mrb[0].mxu0 %v2409_v6  ;;  %1758 = vmatmul.mubr.f32.vlgmr.msra.gmra.mrb[0].mxu1 %v2409_v6  ;;  %v529_v1 = vsub.f32 %v2491_v19, %v2817_v44  ;;  %v2818_v6 = vand.u32 4294901760, %v2495_v40  ;;  %v2569_v33 = vsub.f32 %v345_v36, %v2513_v50  ;;  %v1889_v37 = vpack.c.bf16 %v518_v35, %v506_v14 }
  0xc8   : > { %1884 = vmatpush1.bf16.msra.mxu0 %v2411_v4  ;;  %1975 = vmatpush3.bf16.msra.mxu1 %v2413_v20  ;;  %v1163_v43 = vsub.f32 %v2499_v15, %v2820_v8  ;;  %v2821_v4 = vand.u32 4294901760, %v2503_v25  ;;  %v542_v42 = vand.u32 4294901760, %v541_v38  ;;  %v552_v53 = vand.u32 4294901760, %v2540_v29 }
  0xc9   : > { %v535_v63 = vsub.f32 %v2495_v40, %v2818_v6  ;;  %1886 = vmatprep.subr.bf16.mxu0 %v1885_v47  ;;  %1976 = vmatprep.subr.bf16.mxu1 %v2815_v49  ;;  %v1891_v47 = vpack.c.bf16 %v524_v17, %v512_v46  ;;  %v548_v44 = vand.u32 4294901760, %v547_v13  ;;  %v1980_v56 = vpack.c.bf16 %v1157_v26, %v1150_v39 }
  0xca   : > { %v1170_v20 = vsub.f32 %v2503_v25, %v2821_v4  ;;  %608 = vmatprep.mubr.f32.mxu0 %v2809_v54  ;;  %1778 = vmatprep.mubr.msk.f32.mxu1 %vm2096_vm0, %v2809_v54  ;;  %v530_v36 = vand.u32 4294901760, %v529_v1  ;;  %v1164_v6 = vand.u32 4294901760, %v1163_v43  ;;  %v558_v8 = vand.u32 4294901760, %v2566_v5 }
  0xcb   : > { %v536_v24 = vand.u32 4294901760, %v535_v63  ;;  %v1176_v4 = vand.u32 4294901760, %v2569_v33  ;;  %v1897_v26 = vpack.c.bf16 %v2294_v3, %v2258_v55  ;;  %v1899_v63 = vpack.c.bf16 %v2289_v2, %v2273_v61 }
  0xcc   : > { %1888 = vmatpush1.bf16.msra.mxu0 %v1887_v12  ;;  %1978 = vmatpush3.bf16.msra.mxu1 %v1977_v58  ;;  %v1171_v31 = vand.u32 4294901760, %v1170_v20  ;;  %v1893_v35 = vpack.c.bf16 %v542_v42, %v530_v36  ;;  %v553_v12 = vsub.f32 %v2540_v29, %v552_v53  ;;  %v559_v39 = vsub.f32 %v2566_v5, %v558_v8 }
  0xcd   : > { %1890 = vmatprep.subr.bf16.mxu0 %v1889_v37  ;;  %1979 = vmatprep.subr.bf16.mxu1 %v2815_v49  ;;  %v1177_v46 = vsub.f32 %v2569_v33, %v1176_v4  ;;  %v1895_v58 = vpack.c.bf16 %v548_v44, %v536_v24  ;;  %v1986_v13 = vpack.c.bf16 %v2299_v9, %v2270_v60 }
  0xce   : > { %v1983_v14 = vpack.c.bf16 %v1171_v31, %v1164_v6  ;;  %v554_v38 = vand.u32 4294901760, %v553_v12  ;;  %v560_v17 = vand.u32 4294901760, %v559_v39  ;;  %v1901_v43 = vpack.c.bf16 %v2364_v28, %v2343_v48  ;;  %v2822_v6 = vld [vmem:[#allocation2_spill] sm:$0xff]  ;;  %v2823_v31 = vld [vmem:[#allocation3_spill] sm:$0xff]  ;;  %v2827_v39 = vld [vmem:[#allocation8_spill] sm:$0xff] }
  0xcf   : > { %v1178_v1 = vand.u32 4294901760, %v1177_v46  ;;  %v1903_v20 = vpack.c.bf16 %v2374_v59, %v2369_v57  ;;  %v1989_v37 = vpack.c.bf16 %v2387_v34, %v2380_v27  ;;  %v1905_v42 = vpack.c.bf16 %v2450_v45, %v2440_v11  ;;  %v2826_v12 = vld [vmem:[#allocation6_spill] sm:$0xff]  ;;  %v2828_v46 = vld [vmem:[#allocation9_spill] sm:$0xff] }
  0xd0   : > { %1892 = vmatpush1.bf16.msra.mxu0 %v1891_v47  ;;  %1981 = vmatpush3.bf16.msra.mxu1 %v1980_v56  ;;  %v1907_v47 = vpack.c.bf16 %v2462_v10, %v2457_v52  ;;  %v1992_v24 = vpack.c.bf16 %v2474_v62, %v2467_v51  ;;  %v1909_v44 = vpack.c.bf16 %v2483_v16, %v2491_v19 }
  0xd1   : > { %1894 = vmatprep.subr.bf16.mxu0 %v1893_v35  ;;  %1982 = vmatprep.subr.bf16.mxu1 %v2815_v49  ;;  %v1911_v56 = vpack.c.bf16 %v2497_v30, %v2495_v40  ;;  %v1995_v36 = vpack.c.bf16 %v2503_v25, %v2499_v15  ;;  %v2824_v35 = vld [vmem:[#allocation4_spill] sm:$0xff] }
  0xd4   : > { %1896 = vmatpush1.bf16.msra.mxu0 %v1895_v58  ;;  %1984 = vmatpush3.bf16.msra.mxu1 %v1983_v14  ;;  %v2829_v58 = vld [vmem:[#allocation10_spill] sm:$0xff]  ;;  %v2830_v14 = vand.u32 4294901760, %v2258_v55 }
  0xd5   : > { %555 = vmatprep.subr.mxu0 %v554_v38  ;;  %1776 = vmatprep.subr.mxu1 %v2809_v54  ;;  %v2831_v38 = vand.u32 4294901760, %v2294_v3  ;;  %v2837_v3 = vand.u32 4294901760, %v2343_v48  ;;  %v2843_v48 = vand.u32 4294901760, %v2440_v11  ;;  %v2849_v11 = vand.u32 4294901760, %v2491_v19 }
  0xd8   : > { %561 = vmatpush1.msra.mxu0 %v560_v17  ;;  %1777 = vmatpush3.msra.mxu1 %v1178_v1  ;;  %v1929_v17 = vpack.c.bf16 %v2831_v38, %v2830_v14  ;;  %v2832_v1 = vand.u32 4294901760, %v2273_v61  ;;  %v2839_v61 = vand.u32 4294901760, %v2369_v57  ;;  %v2845_v57 = vand.u32 4294901760, %v2457_v52 }
  0xd9   : > { %1898 = vmatprep.subr.bf16.mxu0 %v1897_v26  ;;  %1985 = vmatprep.subr.bf16.mxu1 %v2815_v49  ;;  %v2833_v26 = vand.u32 4294901760, %v2289_v2  ;;  %v2851_v52 = vand.u32 4294901760, %v2495_v40 }
  0xda   : > { %610 = vmatmul.mubr.f32.vlgmr.msra.gmra.mrb[0].mxu0 %v2284_v7  ;;  %1779 = vmatmul.mubr.f32.vlgmr.msra.gmra.mrb[0].mxu1 %v2284_v7 }
  0xdb   : > { %1900 = vmatpush1.bf16.msra.mxu0 %v1899_v63  ;;  %1987 = vmatpush3.bf16.msra.mxu1 %v1986_v13  ;;  %v1931_v63 = vpack.c.bf16 %v2833_v26, %v2832_v1  ;;  %v2834_v13 = vand.u32 4294901760, %v2270_v60  ;;  %v2840_v60 = vand.u32 4294901760, %v2374_v59  ;;  %v2846_v59 = vand.u32 4294901760, %v2462_v10 }
  0xdc   : > { %1902 = vmatprep.subr.bf16.mxu0 %v1901_v43  ;;  %1988 = vmatprep.subr.bf16.mxu1 %v2815_v49  ;;  %v2835_v43 = vand.u32 4294901760, %v2299_v9  ;;  %v2841_v9 = vand.u32 4294901760, %v2380_v27  ;;  %v2852_v10 = vand.u32 4294901760, %v2497_v30 }
  0xdd   : > { %716 = vmatprep.mubr.f32.mxu0 %v2809_v54  ;;  %1799 = vmatprep.mubr.msk.f32.mxu1 %vm2096_vm0, %v2809_v54  ;;  %v1935_v2 = vpack.c.bf16 %v2840_v60, %v2839_v61  ;;  %v1939_v27 = vpack.c.bf16 %v2846_v59, %v2845_v57 }
  0xde   : > { %v2010_v55 = vpack.c.bf16 %v2835_v43, %v2834_v13  ;;  %v1943_v38 = vpack.c.bf16 %v2852_v10, %v2851_v52 }
  0xdf   : > { %1904 = vmatpush1.bf16.msra.mxu0 %v1903_v20  ;;  %1990 = vmatpush3.bf16.msra.mxu1 %v1989_v37  ;;  %v2836_v20 = vld [vmem:[#allocation7_spill] sm:$0xff]  ;;  %v2838_v37 = vand.u32 4294901760, %v2364_v28  ;;  %v2844_v28 = vand.u32 4294901760, %v2450_v45  ;;  %v2850_v45 = vand.u32 4294901760, %v2483_v16 }
  0xe0   : > { %1906 = vmatprep.subr.bf16.mxu0 %v1905_v42  ;;  %1991 = vmatprep.subr.bf16.mxu1 %v2815_v49 }
  0xe1   : > { %v1933_v42 = vpack.c.bf16 %v2838_v37, %v2837_v3  ;;  %v1941_v14 = vpack.c.bf16 %v2850_v45, %v2849_v11 }
  0xe3   : > { %1908 = vmatpush1.bf16.msra.mxu0 %v1907_v47  ;;  %1993 = vmatpush3.bf16.msra.mxu1 %v1992_v24  ;;  %v2842_v47 = vand.u32 4294901760, %v2387_v34  ;;  %v2847_v34 = vand.u32 4294901760, %v2467_v51  ;;  %v2853_v51 = vand.u32 4294901760, %v2499_v15 }
  0xe4   : > { %1910 = vmatprep.subr.bf16.mxu0 %v1909_v44  ;;  %1994 = vmatprep.subr.bf16.mxu1 %v2815_v49  ;;  %v1937_v44 = vpack.c.bf16 %v2844_v28, %v2843_v48 }
  0xe5   : > { %v2013_v24 = vpack.c.bf16 %v2842_v47, %v2841_v9 }
  0xe7   : > { %1912 = vmatpush1.bf16.msra.mxu0 %v1911_v56  ;;  %1996 = vmatpush3.bf16.msra.mxu1 %v1995_v36  ;;  %v2848_v56 = vand.u32 4294901760, %v2474_v62  ;;  %v2854_v62 = vand.u32 4294901760, %v2503_v25  ;;  %v1587_v25 = vld [vmem:[%s212_s10 + $0x8] sm:$0xf] }
  0xe8   : > { %666 = vmatprep.subr.mxu0 %v2540_v29  ;;  %1797 = vmatprep.subr.mxu1 %v2809_v54 }
  0xe9   : > { %v2016_v36 = vpack.c.bf16 %v2848_v56, %v2847_v34 }
  0xeb   : > { %669 = vmatpush1.msra.mxu0 %v2566_v5  ;;  %1798 = vmatpush3.msra.mxu1 %v2569_v33 }
  0xec   : > { %1914 = vmatprep.subr.bf16.mxu0 %v2186_v21  ;;  %1997 = vmatprep.subr.bf16.mxu1 %v2815_v49 }
  0xed   : > { %719 = vmatmul.mubr.f32.vlgmr.msra.gmra.mrb[0].mxu0 %v2319_v18  ;;  %1800 = vmatmul.mubr.f32.vlgmr.msra.gmra.mrb[0].mxu1 %v2319_v18  ;;  %v2825_v18 = vld [vmem:[#allocation5_spill] sm:$0xff] }
  0xee   : > { %1916 = vmatpush1.bf16.msra.mxu0 %v2194_v23  ;;  %1999 = vmatpush3.bf16.msra.mxu1 %v2190_v22 }
  0xef   : > { %1918 = vmatprep.subr.bf16.mxu0 %v2212_v32  ;;  %2000 = vmatprep.subr.bf16.mxu1 %v2815_v49 }
  0xf0   : > { %807 = vmatprep.mubr.f32.mxu0 %v2809_v54  ;;  %1820 = vmatprep.mubr.msk.f32.mxu1 %vm2096_vm0, %v2809_v54 }
  0xf2   : > { %1920 = vmatpush1.bf16.msra.mxu0 %v2822_v6  ;;  %2002 = vmatpush3.bf16.msra.mxu1 %v2823_v31 }
  0xf3   : > { %1922 = vmatprep.subr.bf16.mxu0 %v2824_v35  ;;  %2003 = vmatprep.subr.bf16.mxu1 %v2815_v49 }
  0xf6   : > { %1924 = vmatpush1.bf16.msra.mxu0 %v2825_v18  ;;  %2005 = vmatpush3.bf16.msra.mxu1 %v2826_v12 }
  0xf7   : > { %1926 = vmatprep.subr.bf16.mxu0 %v2827_v39  ;;  %2006 = vmatprep.subr.bf16.mxu1 %v2815_v49 }
  0xfa   : > { %1928 = vmatpush1.bf16.msra.mxu0 %v2828_v46  ;;  %2008 = vmatpush3.bf16.msra.mxu1 %v2829_v58 }
  0xfb   : > { %758 = vmatprep.subr.mxu0 %v2485_v0  ;;  %1818 = vmatprep.subr.mxu1 %v2809_v54 }
  0xfe   : > { %760 = vmatpush1.msra.mxu0 %v2511_v41  ;;  %1819 = vmatpush3.msra.mxu1 %v2513_v50 }
  0xff   : > { %1930 = vmatprep.subr.bf16.mxu0 %v1929_v17  ;;  %2009 = vmatprep.subr.bf16.mxu1 %v2815_v49  ;;  %v2019_v17 = vpack.c.bf16 %v2854_v62, %v2853_v51 }
 0x100   : > { %811 = vmatmul.mubr.f32.vlgmr.msra.gmra.mrb[0].mxu0 %v2836_v20  ;;  %1821 = vmatmul.mubr.f32.vlgmr.msra.gmra.mrb[0].mxu1 %v2836_v20 }
 0x101   : > { %1932 = vmatpush1.bf16.msra.mxu0 %v1931_v63  ;;  %2011 = vmatpush3.bf16.msra.mxu1 %v2010_v55 }
 0x102   : > { %1934 = vmatprep.subr.bf16.mxu0 %v1933_v42  ;;  %2012 = vmatprep.subr.bf16.mxu1 %v2815_v49 }
 0x103   : > { %935 = vmatprep.mubr.f32.mxu0 %v2809_v54  ;;  %1841 = vmatprep.mubr.msk.f32.mxu1 %vm2096_vm0, %v2809_v54 }
 0x105   : > { %1936 = vmatpush1.bf16.msra.mxu0 %v1935_v2  ;;  %2014 = vmatpush3.bf16.msra.mxu1 %v2013_v24 }
 0x106   : > { %1938 = vmatprep.subr.bf16.mxu0 %v1937_v44  ;;  %2015 = vmatprep.subr.bf16.mxu1 %v2815_v49 }
 0x109   : > { %1940 = vmatpush1.bf16.msra.mxu0 %v1939_v27  ;;  %2017 = vmatpush3.bf16.msra.mxu1 %v2016_v36 }
 0x10a   : > { %1942 = vmatprep.subr.bf16.mxu0 %v1941_v14  ;;  %2018 = vmatprep.subr.bf16.mxu1 %v2815_v49 }
 0x10d   : > { %1944 = vmatpush1.bf16.msra.mxu0 %v1943_v38  ;;  %2020 = vmatpush3.bf16.msra.mxu1 %v2019_v17 }
 0x10e   : > { %884 = vmatprep.subr.mxu0 %v552_v53  ;;  %1839 = vmatprep.subr.mxu1 %v2809_v54 }
 0x111   : > { %888 = vmatpush1.msra.mxu0 %v558_v8  ;;  %1840 = vmatpush3.msra.mxu1 %v1176_v4 }
 0x112   : > { %1946 = vmatprep.subr.bf16.mxu0 %v2186_v21  ;;  %2021 = vmatprep.subr.bf16.mxu1 %v2815_v49  ;;  %v354_v21 = vpop.permute.xlu0 %353 }
 0x113   : > { %937 = vmatmul.mubr.f32.vlgmr.msra.gmra.mrb[0].mxu0 %v2284_v7  ;;  %1842 = vmatmul.mubr.f32.vlgmr.msra.gmra.mrb[0].mxu1 %v2284_v7 }
 0x114   : > { %1948 = vmatpush1.bf16.msra.mxu0 %v2194_v23  ;;  %2023 = vmatpush3.bf16.msra.mxu1 %v2190_v22  ;;  %v1586_v22 = vld [vmem:[%s212_s10] sm:$0xff] }
 0x115   : > { %1950 = vmatprep.subr.bf16.mxu0 %v2212_v32  ;;  %2024 = vmatprep.subr.bf16.mxu1 %v2815_v49  ;;  %v1589_v40 = vcombine.high %v1586_v22, %v1586_v22 }
 0x116   : > { %1025 = vmatprep.mubr.f32.mxu0 %v2809_v54  ;;  %1862 = vmatprep.mubr.msk.f32.mxu1 %vm2096_vm0, %v2809_v54 }
 0x118   : > { %1952 = vmatpush1.bf16.msra.mxu0 %v2822_v6  ;;  %2026 = vmatpush3.bf16.msra.mxu1 %v2823_v31 }
 0x119   : > { %1954 = vmatprep.subr.bf16.mxu0 %v2824_v35  ;;  %2027 = vmatprep.subr.bf16.mxu1 %v2815_v49 }
 0x11c   : > { %1956 = vmatpush1.bf16.msra.mxu0 %v2825_v18  ;;  %2029 = vmatpush3.bf16.msra.mxu1 %v2826_v12 }
 0x11d   : > { %1958 = vmatprep.subr.bf16.mxu0 %v2827_v39  ;;  %2030 = vmatprep.subr.bf16.mxu1 %v2815_v49 }
 0x120   : > { %1960 = vmatpush1.bf16.msra.mxu0 %v2828_v46  ;;  %2032 = vmatpush3.bf16.msra.mxu1 %v2829_v58 }
 0x121   : > { %976 = vmatprep.subr.mxu0 %v2485_v0  ;;  %1860 = vmatprep.subr.mxu1 %v2809_v54 }
 0x124   : > { %978 = vmatpush1.msra.mxu0 %v2511_v41  ;;  %1861 = vmatpush3.msra.mxu1 %v2513_v50 }
 0x125   : > { %1027 = vmatmul.mubr.f32.vlgmr.msra.gmra.mrb[0].mxu0 %v2284_v7  ;;  %1863 = vmatmul.mubr.f32.vlgmr.msra.gmra.mrb[0].mxu1 %v2284_v7 }
 0x1f8   : > { %v1028_v23 = vpop.f32.mrb[0].mxu0  ;;  %v1579_v32 = vpop.f32.mrb[0].mxu1 }
 0x1f9   : > { %v2033_v0 = vadd.f32 %v1028_v23, %v354_v21  ;;  %v2035_v16 = vadd.f32 %v1579_v32, %v354_v21  ;;  %v1030_v30 = vpop.f32.mrb[1].mxu0  ;;  %v1864_v54 = vpop.f32.mrb[1].mxu1 }
 0x1fa   : > { %v2034_v19 = vadd.f32 %v1030_v30, %v354_v21 }
 0x1fb   : > { %v1583_v15 = vmax.f32 %v2033_v0, 0.0  ;;  %v1585_v41 = vmax.f32 %v2035_v16, 0.0 }
 0x1fc   : > { %v1584_v7 = vmax.f32 %v2034_v19, 0.0 }
 0x1fd   : > { %v1591_v50 = vadd.f32 %v1586_v22, %v1583_v15  ;;  %v1593_v49 = vadd.f32 %v1587_v25, %v1585_v41 }
 0x1fe   : > { %v1592_v29 = vadd.f32 %v1589_v40, %v1584_v7 }
 0x1ff   : > { %1599 = vst [vmem:[%s217_s13 + $0x8] sm:$0xf] %v1593_v49 }
 0x200   : > { %v1596_v5 = vcombine.low %v1591_v50, %v1592_v29 }
 0x202   : > { %1598 = vst [vmem:[%s217_s13] sm:$0xff] %v1596_v5 }
 0x203 PF: > { %s14_s15 = sadd.s32 1, %s2085_s15  }
 0x204   : > { %p11_p4 = scmp.ge.s32.totalorder %s14_s15, 4  }
 0x206   :  { %13 = sbr.rel (!%p11_p4) target bundleno = 1 (0x1), region = 69 }

</bundles_post_ra>
